<compile_context>
chip_gen: v7x
topology: tpu7x:2x2x1
jax: 0.10.0
libtpu: 0.0.40
codegen_flags: <defaults>
</compile_context>

<pallas_src>
import functools

import jax
import jax.numpy as jnp
from jax.experimental import pallas as pl
from jax.experimental.pallas import tpu as pltpu


def _discriminator_kernel(x_ref, w0_ref, wr_ref, b_ref, out_ref, *,
                          n_layers, batch, time, hidden_channels, neg_slope):
    """Fused 10-layer Conv1d(k=3,pad=1)+LeakyReLU chain.

    x_ref:   (B*T, 64)            zero-padded input, time-major rows (r = b*T + t)
    w0_ref:  (192, 128)           layer-0 stacked weight (K = 3*64, N padded to 128)
    wr_ref:  (9, 96, 128)         layers 1..9 stacked weights (K = 3*32)
    b_ref:   (10, 128)            biases, zero-padded to 128 lanes
    out_ref: (10, B*T, 128)       lane-dense feature slab (one full-lane store/layer)
    """
    bt = batch * time

    # Batch-boundary keep-masks for the shifted taps; computed once, reused by all
    # layers ((BT, 1) broadcasts over the lane axis).
    rows = jax.lax.broadcasted_iota(jnp.int32, (bt, 1), 0)
    t_in_batch = rows % time
    keep_prev = (t_in_batch != 0).astype(jnp.float32)
    keep_next = (t_in_batch != (time - 1)).astype(jnp.float32)

    biases = b_ref[...]                                   # (10, 128), loaded once

    def taps(x):
        # Conv taps: k=0 sees x[t-1], k=1 sees x[t], k=2 sees x[t+1] (zero padding).
        # pltpu.roll follows np.roll: roll(x, 1)[r] = x[r-1]; roll(x, BT-1)[r] =
        # x[(r+1) mod BT].  The masks zero exactly the cross-batch wrap rows.
        x_prev = pltpu.roll(x, 1, axis=0) * keep_prev
        x_next = pltpu.roll(x, bt - 1, axis=0) * keep_next
        return jnp.concatenate([x_prev, x, x_next], axis=-1)

    x = x_ref[...]                                        # (BT, 64)
    for i in range(n_layers):
        w = w0_ref[...] if i == 0 else wr_ref[i - 1, :, :]
        # One MXU matmul per layer: taps folded into K, batch folded into M.
        y = jnp.dot(taps(x), w, preferred_element_type=jnp.float32)   # (BT, 128)
        y = y + biases[i:i + 1, :]
        if i != n_layers - 1:
            y = jnp.maximum(y, neg_slope * y)             # LeakyReLU(0.2)
        out_ref[i, :, :] = y                              # full-lane, aligned store
        if i != n_layers - 1:
            x = y[:, :hidden_channels]                    # real channels for next layer


def _discriminator_pallas(x_in, w0, w_rest, b_all, *, batch, time):
    """x_in: (B*T, 64). Returns the (n_layers, B*T, 128) feature slab."""
    bt, cin_pad = x_in.shape
    n_layers = w_rest.shape[0] + 1
    n_pad = w_rest.shape[2]

    kernel = functools.partial(
        _discriminator_kernel, n_layers=n_layers, batch=batch, time=time,
        hidden_channels=w_rest.shape[1] // 3, neg_slope=0.2)

    return pl.pallas_call(
        kernel,
        grid=(1,),
        in_specs=[
            pl.BlockSpec((bt, cin_pad), lambda i: (0, 0)),
            pl.BlockSpec(w0.shape, lambda i: (0, 0)),
            pl.BlockSpec(w_rest.shape, lambda i: (0, 0, 0)),
            pl.BlockSpec(b_all.shape, lambda i: (0, 0)),
        ],
        out_specs=pl.BlockSpec((n_layers, bt, n_pad), lambda i: (0, 0, 0)),
        out_shape=jax.ShapeDtypeStruct((n_layers, bt, n_pad), jnp.float32),
        compiler_params=pltpu.CompilerParams(
            dimension_semantics=("arbitrary",)),
    )(x_in, w0, w_rest, b_all)


def _stack_pad_weight(w, cin_pad, n_pad):
    """PyTorch Conv1d weight (Cout, Cin, 3) -> stacked, padded (3*cin_pad, n_pad).

    Row k*cin_pad + cin holds w[cout, cin, k] (zeros in padded rows / cols), matching
    X_stack = [x[t-1] | x[t] | x[t+1]] along the lane axis.
    """
    cout, cin, k = w.shape
    w_t = jnp.transpose(w, (2, 1, 0))                                # (k, cin, cout)
    w_t = jnp.pad(w_t, ((0, 0), (0, cin_pad - cin), (0, n_pad - cout)))
    return w_t.reshape(k * cin_pad, n_pad)


def prepare_params(params, n_pad=128):
    """Hoisted, one-time parameter packing (done once, outside the forward).

    Returns (w0 (192,128), w_rest (9,96,128), b_all (10,128)).
    """
    w0_raw, _ = params[0]
    cin0 = w0_raw.shape[1]
    cin0_pad = ((cin0 + 63) // 64) * 64                              # 60 -> 64
    w0 = _stack_pad_weight(w0_raw, cin0_pad, n_pad)
    w_rest = jnp.stack(
        [_stack_pad_weight(w, w.shape[1], n_pad) for w, _ in params[1:]], axis=0)
    b_all = jnp.stack(
        [jnp.pad(b, (0, n_pad - b.shape[0])) for _, b in params], axis=0)
    return (w0, w_rest, b_all)


@jax.jit
def discriminator_forward(x_nct, prepared):
    """x_nct: (B, C, T) PyTorch layout. Returns (out (B,1,T), feature_list of 10)."""
    w0, w_rest, b_all = prepared
    B, c_in, T = x_nct.shape
    n_layers = w_rest.shape[0] + 1
    hidden_c = w_rest.shape[1] // 3
    cin_pad = w0.shape[0] // 3
    n_pad = w_rest.shape[2]

    # One input layout change + zero-pad channels (60 -> 64) for aligned tap offsets.
    x_btc = jnp.transpose(x_nct, (0, 2, 1)).reshape(B * T, c_in)
    x_in = jnp.pad(x_btc, ((0, 0), (0, cin_pad - c_in)))

    slab = _discriminator_pallas(x_in, w0, w_rest, b_all, batch=B, time=T)

    # Unpack the lane-dense slab back to PyTorch (B, C, T) layout (cheap XLA
    # slices / transposes inside the same jit).
    feats = []
    for i in range(n_layers):
        c = hidden_c if i != n_layers - 1 else 1
        f = slab[i].reshape(B, T, n_pad)[:, :, :c]
        feats.append(jnp.transpose(f, (0, 2, 1)))
    return feats[-1], feats


def init_params(key, conv_in_channels=60, conv_channels=32, layers=10):
    """Deterministic init. Weights kept in PyTorch Conv1d layout (Cout, Cin, K)."""
    params = []
    cin = conv_in_channels
    for i in range(layers):
        cout = 1 if i == layers - 1 else conv_channels
        key, kw, kb = jax.random.split(key, 3)
        w = 0.1 * jax.random.normal(kw, (cout, cin, 3), jnp.float32)
        b = 0.1 * jax.random.normal(kb, (cout,), jnp.float32)
        params.append((w, b))
        cin = conv_channels   # after layer 0 every layer consumes conv_channels
    return params


def _reference_forward(x_nct, params):
    """Pure-JAX reference (lax conv) for correctness checking."""
    x = x_nct
    feats = []
    n = len(params)
    for i, (w, b) in enumerate(params):
        y = jax.lax.conv_general_dilated(
            x, w, window_strides=(1,), padding=((1, 1),),
            dimension_numbers=("NCH", "OIH", "NCH"))
        y = y + b[None, :, None]
        if i != n - 1:
            y = jnp.where(y > 0, y, 0.2 * y)
        feats.append(y)
        x = y
    return feats[-1], feats


if __name__ == "__main__":
    B, C_in, T = 2, 60, 16
    conv_channels = 32

    root = jax.random.PRNGKey(0)
    kx, kp = jax.random.split(root)
    x = jax.random.normal(kx, (B, C_in, T), jnp.float32)

    params = init_params(kp, conv_in_channels=C_in,
                         conv_channels=conv_channels, layers=10)
    prepared = prepare_params(params)   # packing / padding hoisted out of the forward

    out, feature_list = discriminator_forward(x, prepared)
    out = jax.block_until_ready(out)
    feature_list = [jax.block_until_ready(f) for f in feature_list]

    assert out.shape == (B, 1, T)
    assert len(feature_list) == 10
    assert all(f.shape == (B, conv_channels, T) for f in feature_list[:-1])
    assert feature_list[-1].shape == (B, 1, T)

    ref_out, ref_feats = _reference_forward(x, params)
    assert jnp.allclose(out, ref_out, atol=1e-4, rtol=1e-4)
    for f, rf in zip(feature_list, ref_feats):
        assert f.shape == rf.shape
        assert jnp.allclose(f, rf, atol=1e-4, rtol=1e-4)

    print("KERNEL_OK")
</pallas_src>

<mosaic_0001>
module attributes {stable_mosaic.version = 11 : i64} {
  func.func @_discriminator_kernel(%arg0: i32, %arg1: memref<32x64xf32, #tpu.memory_space<vmem>>, %arg2: memref<192x128xf32, #tpu.memory_space<vmem>>, %arg3: memref<9x96x128xf32, #tpu.memory_space<vmem>>, %arg4: memref<10x128xf32, #tpu.memory_space<vmem>>, %arg5: memref<10x32x128xf32, #tpu.memory_space<vmem>>) attributes {dimension_semantics = [#tpu.dimension_semantics<arbitrary>], iteration_bounds = array<i64: 1>, scalar_prefetch = 0 : i64, scratch_operands = 0 : i64, tpu.core_type = #tpu.core_type<tc>, window_params = [{pipeline_mode = #tpu.pipeline_mode<synchronous>, transform_indices = @transform_0, window_bounds = array<i64: 32, 64>}, {pipeline_mode = #tpu.pipeline_mode<synchronous>, transform_indices = @transform_1, window_bounds = array<i64: 192, 128>}, {pipeline_mode = #tpu.pipeline_mode<synchronous>, transform_indices = @transform_2, window_bounds = array<i64: 9, 96, 128>}, {pipeline_mode = #tpu.pipeline_mode<synchronous>, transform_indices = @transform_3, window_bounds = array<i64: 10, 128>}, {pipeline_mode = #tpu.pipeline_mode<synchronous>, transform_indices = @transform_4, window_bounds = array<i64: 10, 32, 128>}]} {
    %0 = tpu.iota {dimensions = array<i32: 0>} : vector<32x1xi32>
    %c16_i32 = arith.constant 16 : i32
    %c0_i32 = arith.constant 0 : i32
    %1 = arith.cmpi eq, %c16_i32, %c0_i32 : i32
    %c1_i32 = arith.constant 1 : i32
    %2 = arith.select %1, %c1_i32, %c16_i32 : i32
    %3 = vector.broadcast %2 : i32 to vector<32x1xi32>
    %4 = arith.remsi %0, %3 : vector<32x1xi32>
    %c0_i32_0 = arith.constant 0 : i32
    %5 = vector.broadcast %c0_i32_0 : i32 to vector<32x1xi32>
    %6 = arith.cmpi ne, %4, %5 : vector<32x1xi32>
    %c0_i32_1 = arith.constant 0 : i32
    %7 = vector.broadcast %c0_i32_1 : i32 to vector<32x1xi32>
    %8 = arith.cmpi slt, %4, %7 : vector<32x1xi32>
    %c0_i32_2 = arith.constant 0 : i32
    %9 = arith.cmpi slt, %2, %c0_i32_2 : i32
    %10 = vector.broadcast %9 : i1 to vector<32x1xi1>
    %11 = vector.broadcast %10 : vector<32x1xi1> to vector<32x1xi1>
    %12 = arith.xori %8, %11 : vector<32x1xi1>
    %13 = arith.andi %12, %6 : vector<32x1xi1>
    %14 = vector.broadcast %2 : i32 to vector<32x1xi32>
    %15 = arith.addi %4, %14 : vector<32x1xi32>
    %16 = arith.select %13, %15, %4 : vector<32x1xi1>, vector<32x1xi32>
    %c0_i32_3 = arith.constant 0 : i32
    %17 = vector.broadcast %c0_i32_3 : i32 to vector<32x1xi32>
    %18 = arith.cmpi ne, %16, %17 : vector<32x1xi32>
    %19 = arith.extui %18 : vector<32x1xi1> to vector<32x1xi32>
    %20 = arith.sitofp %19 : vector<32x1xi32> to vector<32x1xf32>
    %c15_i32 = arith.constant 15 : i32
    %21 = vector.broadcast %c15_i32 : i32 to vector<32x1xi32>
    %22 = arith.cmpi ne, %16, %21 : vector<32x1xi32>
    %23 = arith.extui %22 : vector<32x1xi1> to vector<32x1xi32>
    %24 = arith.sitofp %23 : vector<32x1xi32> to vector<32x1xf32>
    %c0 = arith.constant 0 : index
    %c0_4 = arith.constant 0 : index
    %25 = vector.load %arg4[%c0, %c0_4] : memref<10x128xf32, #tpu.memory_space<vmem>>, vector<10x128xf32>
    %c0_5 = arith.constant 0 : index
    %c0_6 = arith.constant 0 : index
    %26 = vector.load %arg1[%c0_5, %c0_6] : memref<32x64xf32, #tpu.memory_space<vmem>>, vector<32x64xf32>
    %c0_7 = arith.constant 0 : index
    %c0_8 = arith.constant 0 : index
    %27 = vector.load %arg2[%c0_7, %c0_8] : memref<192x128xf32, #tpu.memory_space<vmem>>, vector<192x128xf32>
    %c1_i32_9 = arith.constant 1 : i32
    %28 = tpu.dynamic_rotate %26 by %c1_i32_9 dim 0 : vector<32x64xf32>, i32 -> vector<32x64xf32>
    %29 = vector.broadcast %20 : vector<32x1xf32> to vector<32x64xf32>
    %30 = arith.mulf %28, %29 : vector<32x64xf32>
    %c31_i32 = arith.constant 31 : i32
    %31 = tpu.dynamic_rotate %26 by %c31_i32 dim 0 : vector<32x64xf32>, i32 -> vector<32x64xf32>
    %32 = vector.broadcast %24 : vector<32x1xf32> to vector<32x64xf32>
    %33 = arith.mulf %31, %32 : vector<32x64xf32>
    %34 = tpu.concatenate %30, %26, %33 in 1 : vector<32x64xf32>, vector<32x64xf32>, vector<32x64xf32> -> vector<32x192xf32>
    %cst = arith.constant dense<0.000000e+00> : vector<32x128xf32>
    %35 = tpu.matmul %34, %27, %cst {dimension_numbers = #tpu.dot_dimension_numbers<[1], [0], [0], [1], [0, 0, 1, 1], [], []>} : vector<32x192xf32>, vector<192x128xf32>, vector<32x128xf32> -> vector<32x128xf32>
    %36 = vector.extract_strided_slice %25 {offsets = [0, 0], sizes = [1, 128], strides = [1, 1]} : vector<10x128xf32> to vector<1x128xf32>
    %37 = vector.broadcast %36 : vector<1x128xf32> to vector<32x128xf32>
    %38 = arith.addf %35, %37 : vector<32x128xf32>
    %cst_10 = arith.constant 2.000000e-01 : f32
    %39 = vector.broadcast %cst_10 : f32 to vector<32x128xf32>
    %40 = arith.mulf %39, %38 : vector<32x128xf32>
    %41 = arith.maximumf %38, %40 : vector<32x128xf32>
    %c0_11 = arith.constant 0 : index
    %c0_12 = arith.constant 0 : index
    %c0_13 = arith.constant 0 : index
    %42 = vector.load %arg5[%c0_11, %c0_12, %c0_13] : memref<10x32x128xf32, #tpu.memory_space<vmem>>, vector<1x32x128xf32>
    %43 = vector.shape_cast %42 : vector<1x32x128xf32> to vector<32x128xf32>
    %44 = vector.shape_cast %41 : vector<32x128xf32> to vector<1x32x128xf32>
    tpu.vector_store %arg5[%c0_11, %c0_12, %c0_13], %44 {strides = array<i32>} : memref<10x32x128xf32, #tpu.memory_space<vmem>>, vector<1x32x128xf32>,
    %45 = vector.extract_strided_slice %41 {offsets = [0, 0], sizes = [32, 32], strides = [1, 1]} : vector<32x128xf32> to vector<32x32xf32>
    %c0_14 = arith.constant 0 : index
    %c0_15 = arith.constant 0 : index
    %c0_16 = arith.constant 0 : index
    %46 = vector.load %arg3[%c0_14, %c0_15, %c0_16] : memref<9x96x128xf32, #tpu.memory_space<vmem>>, vector<1x96x128xf32>
    %47 = vector.shape_cast %46 : vector<1x96x128xf32> to vector<96x128xf32>
    %c1_i32_17 = arith.constant 1 : i32
    %48 = tpu.dynamic_rotate %45 by %c1_i32_17 dim 0 : vector<32x32xf32>, i32 -> vector<32x32xf32>
    %49 = vector.broadcast %20 : vector<32x1xf32> to vector<32x32xf32>
    %50 = arith.mulf %48, %49 : vector<32x32xf32>
    %c31_i32_18 = arith.constant 31 : i32
    %51 = tpu.dynamic_rotate %45 by %c31_i32_18 dim 0 : vector<32x32xf32>, i32 -> vector<32x32xf32>
    %52 = vector.broadcast %24 : vector<32x1xf32> to vector<32x32xf32>
    %53 = arith.mulf %51, %52 : vector<32x32xf32>
    %54 = tpu.concatenate %50, %45, %53 in 1 : vector<32x32xf32>, vector<32x32xf32>, vector<32x32xf32> -> vector<32x96xf32>
    %cst_19 = arith.constant dense<0.000000e+00> : vector<32x128xf32>
    %55 = tpu.matmul %54, %47, %cst_19 {dimension_numbers = #tpu.dot_dimension_numbers<[1], [0], [0], [1], [0, 0, 1, 1], [], []>} : vector<32x96xf32>, vector<96x128xf32>, vector<32x128xf32> -> vector<32x128xf32>
    %56 = vector.extract_strided_slice %25 {offsets = [1, 0], sizes = [1, 128], strides = [1, 1]} : vector<10x128xf32> to vector<1x128xf32>
    %57 = vector.broadcast %56 : vector<1x128xf32> to vector<32x128xf32>
    %58 = arith.addf %55, %57 : vector<32x128xf32>
    %cst_20 = arith.constant 2.000000e-01 : f32
    %59 = vector.broadcast %cst_20 : f32 to vector<32x128xf32>
    %60 = arith.mulf %59, %58 : vector<32x128xf32>
    %61 = arith.maximumf %58, %60 : vector<32x128xf32>
    %c1 = arith.constant 1 : index
    %c0_21 = arith.constant 0 : index
    %c0_22 = arith.constant 0 : index
    %62 = vector.load %arg5[%c1, %c0_21, %c0_22] : memref<10x32x128xf32, #tpu.memory_space<vmem>>, vector<1x32x128xf32>
    %63 = vector.shape_cast %62 : vector<1x32x128xf32> to vector<32x128xf32>
    %64 = vector.shape_cast %61 : vector<32x128xf32> to vector<1x32x128xf32>
    tpu.vector_store %arg5[%c1, %c0_21, %c0_22], %64 {strides = array<i32>} : memref<10x32x128xf32, #tpu.memory_space<vmem>>, vector<1x32x128xf32>,
    %65 = vector.extract_strided_slice %61 {offsets = [0, 0], sizes = [32, 32], strides = [1, 1]} : vector<32x128xf32> to vector<32x32xf32>
    %c1_23 = arith.constant 1 : index
    %c0_24 = arith.constant 0 : index
    %c0_25 = arith.constant 0 : index
    %66 = vector.load %arg3[%c1_23, %c0_24, %c0_25] : memref<9x96x128xf32, #tpu.memory_space<vmem>>, vector<1x96x128xf32>
    %67 = vector.shape_cast %66 : vector<1x96x128xf32> to vector<96x128xf32>
    %c1_i32_26 = arith.constant 1 : i32
    %68 = tpu.dynamic_rotate %65 by %c1_i32_26 dim 0 : vector<32x32xf32>, i32 -> vector<32x32xf32>
    %69 = vector.broadcast %20 : vector<32x1xf32> to vector<32x32xf32>
    %70 = arith.mulf %68, %69 : vector<32x32xf32>
    %c31_i32_27 = arith.constant 31 : i32
    %71 = tpu.dynamic_rotate %65 by %c31_i32_27 dim 0 : vector<32x32xf32>, i32 -> vector<32x32xf32>
    %72 = vector.broadcast %24 : vector<32x1xf32> to vector<32x32xf32>
    %73 = arith.mulf %71, %72 : vector<32x32xf32>
    %74 = tpu.concatenate %70, %65, %73 in 1 : vector<32x32xf32>, vector<32x32xf32>, vector<32x32xf32> -> vector<32x96xf32>
    %cst_28 = arith.constant dense<0.000000e+00> : vector<32x128xf32>
    %75 = tpu.matmul %74, %67, %cst_28 {dimension_numbers = #tpu.dot_dimension_numbers<[1], [0], [0], [1], [0, 0, 1, 1], [], []>} : vector<32x96xf32>, vector<96x128xf32>, vector<32x128xf32> -> vector<32x128xf32>
    %76 = vector.extract_strided_slice %25 {offsets = [2, 0], sizes = [1, 128], strides = [1, 1]} : vector<10x128xf32> to vector<1x128xf32>
    %77 = vector.broadcast %76 : vector<1x128xf32> to vector<32x128xf32>
    %78 = arith.addf %75, %77 : vector<32x128xf32>
    %cst_29 = arith.constant 2.000000e-01 : f32
    %79 = vector.broadcast %cst_29 : f32 to vector<32x128xf32>
    %80 = arith.mulf %79, %78 : vector<32x128xf32>
    %81 = arith.maximumf %78, %80 : vector<32x128xf32>
    %c2 = arith.constant 2 : index
    %c0_30 = arith.constant 0 : index
    %c0_31 = arith.constant 0 : index
    %82 = vector.load %arg5[%c2, %c0_30, %c0_31] : memref<10x32x128xf32, #tpu.memory_space<vmem>>, vector<1x32x128xf32>
    %83 = vector.shape_cast %82 : vector<1x32x128xf32> to vector<32x128xf32>
    %84 = vector.shape_cast %81 : vector<32x128xf32> to vector<1x32x128xf32>
    tpu.vector_store %arg5[%c2, %c0_30, %c0_31], %84 {strides = array<i32>} : memref<10x32x128xf32, #tpu.memory_space<vmem>>, vector<1x32x128xf32>,
    %85 = vector.extract_strided_slice %81 {offsets = [0, 0], sizes = [32, 32], strides = [1, 1]} : vector<32x128xf32> to vector<32x32xf32>
    %c2_32 = arith.constant 2 : index
    %c0_33 = arith.constant 0 : index
    %c0_34 = arith.constant 0 : index
    %86 = vector.load %arg3[%c2_32, %c0_33, %c0_34] : memref<9x96x128xf32, #tpu.memory_space<vmem>>, vector<1x96x128xf32>
    %87 = vector.shape_cast %86 : vector<1x96x128xf32> to vector<96x128xf32>
    %c1_i32_35 = arith.constant 1 : i32
    %88 = tpu.dynamic_rotate %85 by %c1_i32_35 dim 0 : vector<32x32xf32>, i32 -> vector<32x32xf32>
    %89 = vector.broadcast %20 : vector<32x1xf32> to vector<32x32xf32>
    %90 = arith.mulf %88, %89 : vector<32x32xf32>
    %c31_i32_36 = arith.constant 31 : i32
    %91 = tpu.dynamic_rotate %85 by %c31_i32_36 dim 0 : vector<32x32xf32>, i32 -> vector<32x32xf32>
    %92 = vector.broadcast %24 : vector<32x1xf32> to vector<32x32xf32>
    %93 = arith.mulf %91, %92 : vector<32x32xf32>
    %94 = tpu.concatenate %90, %85, %93 in 1 : vector<32x32xf32>, vector<32x32xf32>, vector<32x32xf32> -> vector<32x96xf32>
    %cst_37 = arith.constant dense<0.000000e+00> : vector<32x128xf32>
    %95 = tpu.matmul %94, %87, %cst_37 {dimension_numbers = #tpu.dot_dimension_numbers<[1], [0], [0], [1], [0, 0, 1, 1], [], []>} : vector<32x96xf32>, vector<96x128xf32>, vector<32x128xf32> -> vector<32x128xf32>
    %96 = vector.extract_strided_slice %25 {offsets = [3, 0], sizes = [1, 128], strides = [1, 1]} : vector<10x128xf32> to vector<1x128xf32>
    %97 = vector.broadcast %96 : vector<1x128xf32> to vector<32x128xf32>
    %98 = arith.addf %95, %97 : vector<32x128xf32>
    %cst_38 = arith.constant 2.000000e-01 : f32
    %99 = vector.broadcast %cst_38 : f32 to vector<32x128xf32>
    %100 = arith.mulf %99, %98 : vector<32x128xf32>
    %101 = arith.maximumf %98, %100 : vector<32x128xf32>
    %c3 = arith.constant 3 : index
    %c0_39 = arith.constant 0 : index
    %c0_40 = arith.constant 0 : index
    %102 = vector.load %arg5[%c3, %c0_39, %c0_40] : memref<10x32x128xf32, #tpu.memory_space<vmem>>, vector<1x32x128xf32>
    %103 = vector.shape_cast %102 : vector<1x32x128xf32> to vector<32x128xf32>
    %104 = vector.shape_cast %101 : vector<32x128xf32> to vector<1x32x128xf32>
    tpu.vector_store %arg5[%c3, %c0_39, %c0_40], %104 {strides = array<i32>} : memref<10x32x128xf32, #tpu.memory_space<vmem>>, vector<1x32x128xf32>,
    %105 = vector.extract_strided_slice %101 {offsets = [0, 0], sizes = [32, 32], strides = [1, 1]} : vector<32x128xf32> to vector<32x32xf32>
    %c3_41 = arith.constant 3 : index
    %c0_42 = arith.constant 0 : index
    %c0_43 = arith.constant 0 : index
    %106 = vector.load %arg3[%c3_41, %c0_42, %c0_43] : memref<9x96x128xf32, #tpu.memory_space<vmem>>, vector<1x96x128xf32>
    %107 = vector.shape_cast %106 : vector<1x96x128xf32> to vector<96x128xf32>
    %c1_i32_44 = arith.constant 1 : i32
    %108 = tpu.dynamic_rotate %105 by %c1_i32_44 dim 0 : vector<32x32xf32>, i32 -> vector<32x32xf32>
    %109 = vector.broadcast %20 : vector<32x1xf32> to vector<32x32xf32>
    %110 = arith.mulf %108, %109 : vector<32x32xf32>
    %c31_i32_45 = arith.constant 31 : i32
    %111 = tpu.dynamic_rotate %105 by %c31_i32_45 dim 0 : vector<32x32xf32>, i32 -> vector<32x32xf32>
    %112 = vector.broadcast %24 : vector<32x1xf32> to vector<32x32xf32>
    %113 = arith.mulf %111, %112 : vector<32x32xf32>
    %114 = tpu.concatenate %110, %105, %113 in 1 : vector<32x32xf32>, vector<32x32xf32>, vector<32x32xf32> -> vector<32x96xf32>
    %cst_46 = arith.constant dense<0.000000e+00> : vector<32x128xf32>
    %115 = tpu.matmul %114, %107, %cst_46 {dimension_numbers = #tpu.dot_dimension_numbers<[1], [0], [0], [1], [0, 0, 1, 1], [], []>} : vector<32x96xf32>, vector<96x128xf32>, vector<32x128xf32> -> vector<32x128xf32>
    %116 = vector.extract_strided_slice %25 {offsets = [4, 0], sizes = [1, 128], strides = [1, 1]} : vector<10x128xf32> to vector<1x128xf32>
    %117 = vector.broadcast %116 : vector<1x128xf32> to vector<32x128xf32>
    %118 = arith.addf %115, %117 : vector<32x128xf32>
    %cst_47 = arith.constant 2.000000e-01 : f32
    %119 = vector.broadcast %cst_47 : f32 to vector<32x128xf32>
    %120 = arith.mulf %119, %118 : vector<32x128xf32>
    %121 = arith.maximumf %118, %120 : vector<32x128xf32>
    %c4 = arith.constant 4 : index
    %c0_48 = arith.constant 0 : index
    %c0_49 = arith.constant 0 : index
    %122 = vector.load %arg5[%c4, %c0_48, %c0_49] : memref<10x32x128xf32, #tpu.memory_space<vmem>>, vector<1x32x128xf32>
    %123 = vector.shape_cast %122 : vector<1x32x128xf32> to vector<32x128xf32>
    %124 = vector.shape_cast %121 : vector<32x128xf32> to vector<1x32x128xf32>
    tpu.vector_store %arg5[%c4, %c0_48, %c0_49], %124 {strides = array<i32>} : memref<10x32x128xf32, #tpu.memory_space<vmem>>, vector<1x32x128xf32>,
    %125 = vector.extract_strided_slice %121 {offsets = [0, 0], sizes = [32, 32], strides = [1, 1]} : vector<32x128xf32> to vector<32x32xf32>
    %c4_50 = arith.constant 4 : index
    %c0_51 = arith.constant 0 : index
    %c0_52 = arith.constant 0 : index
    %126 = vector.load %arg3[%c4_50, %c0_51, %c0_52] : memref<9x96x128xf32, #tpu.memory_space<vmem>>, vector<1x96x128xf32>
    %127 = vector.shape_cast %126 : vector<1x96x128xf32> to vector<96x128xf32>
    %c1_i32_53 = arith.constant 1 : i32
    %128 = tpu.dynamic_rotate %125 by %c1_i32_53 dim 0 : vector<32x32xf32>, i32 -> vector<32x32xf32>
    %129 = vector.broadcast %20 : vector<32x1xf32> to vector<32x32xf32>
    %130 = arith.mulf %128, %129 : vector<32x32xf32>
    %c31_i32_54 = arith.constant 31 : i32
    %131 = tpu.dynamic_rotate %125 by %c31_i32_54 dim 0 : vector<32x32xf32>, i32 -> vector<32x32xf32>
    %132 = vector.broadcast %24 : vector<32x1xf32> to vector<32x32xf32>
    %133 = arith.mulf %131, %132 : vector<32x32xf32>
    %134 = tpu.concatenate %130, %125, %133 in 1 : vector<32x32xf32>, vector<32x32xf32>, vector<32x32xf32> -> vector<32x96xf32>
    %cst_55 = arith.constant dense<0.000000e+00> : vector<32x128xf32>
    %135 = tpu.matmul %134, %127, %cst_55 {dimension_numbers = #tpu.dot_dimension_numbers<[1], [0], [0], [1], [0, 0, 1, 1], [], []>} : vector<32x96xf32>, vector<96x128xf32>, vector<32x128xf32> -> vector<32x128xf32>
    %136 = vector.extract_strided_slice %25 {offsets = [5, 0], sizes = [1, 128], strides = [1, 1]} : vector<10x128xf32> to vector<1x128xf32>
    %137 = vector.broadcast %136 : vector<1x128xf32> to vector<32x128xf32>
    %138 = arith.addf %135, %137 : vector<32x128xf32>
    %cst_56 = arith.constant 2.000000e-01 : f32
    %139 = vector.broadcast %cst_56 : f32 to vector<32x128xf32>
    %140 = arith.mulf %139, %138 : vector<32x128xf32>
    %141 = arith.maximumf %138, %140 : vector<32x128xf32>
    %c5 = arith.constant 5 : index
    %c0_57 = arith.constant 0 : index
    %c0_58 = arith.constant 0 : index
    %142 = vector.load %arg5[%c5, %c0_57, %c0_58] : memref<10x32x128xf32, #tpu.memory_space<vmem>>, vector<1x32x128xf32>
    %143 = vector.shape_cast %142 : vector<1x32x128xf32> to vector<32x128xf32>
    %144 = vector.shape_cast %141 : vector<32x128xf32> to vector<1x32x128xf32>
    tpu.vector_store %arg5[%c5, %c0_57, %c0_58], %144 {strides = array<i32>} : memref<10x32x128xf32, #tpu.memory_space<vmem>>, vector<1x32x128xf32>,
    %145 = vector.extract_strided_slice %141 {offsets = [0, 0], sizes = [32, 32], strides = [1, 1]} : vector<32x128xf32> to vector<32x32xf32>
    %c5_59 = arith.constant 5 : index
    %c0_60 = arith.constant 0 : index
    %c0_61 = arith.constant 0 : index
    %146 = vector.load %arg3[%c5_59, %c0_60, %c0_61] : memref<9x96x128xf32, #tpu.memory_space<vmem>>, vector<1x96x128xf32>
    %147 = vector.shape_cast %146 : vector<1x96x128xf32> to vector<96x128xf32>
    %c1_i32_62 = arith.constant 1 : i32
    %148 = tpu.dynamic_rotate %145 by %c1_i32_62 dim 0 : vector<32x32xf32>, i32 -> vector<32x32xf32>
    %149 = vector.broadcast %20 : vector<32x1xf32> to vector<32x32xf32>
    %150 = arith.mulf %148, %149 : vector<32x32xf32>
    %c31_i32_63 = arith.constant 31 : i32
    %151 = tpu.dynamic_rotate %145 by %c31_i32_63 dim 0 : vector<32x32xf32>, i32 -> vector<32x32xf32>
    %152 = vector.broadcast %24 : vector<32x1xf32> to vector<32x32xf32>
    %153 = arith.mulf %151, %152 : vector<32x32xf32>
    %154 = tpu.concatenate %150, %145, %153 in 1 : vector<32x32xf32>, vector<32x32xf32>, vector<32x32xf32> -> vector<32x96xf32>
    %cst_64 = arith.constant dense<0.000000e+00> : vector<32x128xf32>
    %155 = tpu.matmul %154, %147, %cst_64 {dimension_numbers = #tpu.dot_dimension_numbers<[1], [0], [0], [1], [0, 0, 1, 1], [], []>} : vector<32x96xf32>, vector<96x128xf32>, vector<32x128xf32> -> vector<32x128xf32>
    %156 = vector.extract_strided_slice %25 {offsets = [6, 0], sizes = [1, 128], strides = [1, 1]} : vector<10x128xf32> to vector<1x128xf32>
    %157 = vector.broadcast %156 : vector<1x128xf32> to vector<32x128xf32>
    %158 = arith.addf %155, %157 : vector<32x128xf32>
    %cst_65 = arith.constant 2.000000e-01 : f32
    %159 = vector.broadcast %cst_65 : f32 to vector<32x128xf32>
    %160 = arith.mulf %159, %158 : vector<32x128xf32>
    %161 = arith.maximumf %158, %160 : vector<32x128xf32>
    %c6 = arith.constant 6 : index
    %c0_66 = arith.constant 0 : index
    %c0_67 = arith.constant 0 : index
    %162 = vector.load %arg5[%c6, %c0_66, %c0_67] : memref<10x32x128xf32, #tpu.memory_space<vmem>>, vector<1x32x128xf32>
    %163 = vector.shape_cast %162 : vector<1x32x128xf32> to vector<32x128xf32>
    %164 = vector.shape_cast %161 : vector<32x128xf32> to vector<1x32x128xf32>
    tpu.vector_store %arg5[%c6, %c0_66, %c0_67], %164 {strides = array<i32>} : memref<10x32x128xf32, #tpu.memory_space<vmem>>, vector<1x32x128xf32>,
    %165 = vector.extract_strided_slice %161 {offsets = [0, 0], sizes = [32, 32], strides = [1, 1]} : vector<32x128xf32> to vector<32x32xf32>
    %c6_68 = arith.constant 6 : index
    %c0_69 = arith.constant 0 : index
    %c0_70 = arith.constant 0 : index
    %166 = vector.load %arg3[%c6_68, %c0_69, %c0_70] : memref<9x96x128xf32, #tpu.memory_space<vmem>>, vector<1x96x128xf32>
    %167 = vector.shape_cast %166 : vector<1x96x128xf32> to vector<96x128xf32>
    %c1_i32_71 = arith.constant 1 : i32
    %168 = tpu.dynamic_rotate %165 by %c1_i32_71 dim 0 : vector<32x32xf32>, i32 -> vector<32x32xf32>
    %169 = vector.broadcast %20 : vector<32x1xf32> to vector<32x32xf32>
    %170 = arith.mulf %168, %169 : vector<32x32xf32>
    %c31_i32_72 = arith.constant 31 : i32
    %171 = tpu.dynamic_rotate %165 by %c31_i32_72 dim 0 : vector<32x32xf32>, i32 -> vector<32x32xf32>
    %172 = vector.broadcast %24 : vector<32x1xf32> to vector<32x32xf32>
    %173 = arith.mulf %171, %172 : vector<32x32xf32>
    %174 = tpu.concatenate %170, %165, %173 in 1 : vector<32x32xf32>, vector<32x32xf32>, vector<32x32xf32> -> vector<32x96xf32>
    %cst_73 = arith.constant dense<0.000000e+00> : vector<32x128xf32>
    %175 = tpu.matmul %174, %167, %cst_73 {dimension_numbers = #tpu.dot_dimension_numbers<[1], [0], [0], [1], [0, 0, 1, 1], [], []>} : vector<32x96xf32>, vector<96x128xf32>, vector<32x128xf32> -> vector<32x128xf32>
    %176 = vector.extract_strided_slice %25 {offsets = [7, 0], sizes = [1, 128], strides = [1, 1]} : vector<10x128xf32> to vector<1x128xf32>
    %177 = vector.broadcast %176 : vector<1x128xf32> to vector<32x128xf32>
    %178 = arith.addf %175, %177 : vector<32x128xf32>
    %cst_74 = arith.constant 2.000000e-01 : f32
    %179 = vector.broadcast %cst_74 : f32 to vector<32x128xf32>
    %180 = arith.mulf %179, %178 : vector<32x128xf32>
    %181 = arith.maximumf %178, %180 : vector<32x128xf32>
    %c7 = arith.constant 7 : index
    %c0_75 = arith.constant 0 : index
    %c0_76 = arith.constant 0 : index
    %182 = vector.load %arg5[%c7, %c0_75, %c0_76] : memref<10x32x128xf32, #tpu.memory_space<vmem>>, vector<1x32x128xf32>
    %183 = vector.shape_cast %182 : vector<1x32x128xf32> to vector<32x128xf32>
    %184 = vector.shape_cast %181 : vector<32x128xf32> to vector<1x32x128xf32>
    tpu.vector_store %arg5[%c7, %c0_75, %c0_76], %184 {strides = array<i32>} : memref<10x32x128xf32, #tpu.memory_space<vmem>>, vector<1x32x128xf32>,
    %185 = vector.extract_strided_slice %181 {offsets = [0, 0], sizes = [32, 32], strides = [1, 1]} : vector<32x128xf32> to vector<32x32xf32>
    %c7_77 = arith.constant 7 : index
    %c0_78 = arith.constant 0 : index
    %c0_79 = arith.constant 0 : index
    %186 = vector.load %arg3[%c7_77, %c0_78, %c0_79] : memref<9x96x128xf32, #tpu.memory_space<vmem>>, vector<1x96x128xf32>
    %187 = vector.shape_cast %186 : vector<1x96x128xf32> to vector<96x128xf32>
    %c1_i32_80 = arith.constant 1 : i32
    %188 = tpu.dynamic_rotate %185 by %c1_i32_80 dim 0 : vector<32x32xf32>, i32 -> vector<32x32xf32>
    %189 = vector.broadcast %20 : vector<32x1xf32> to vector<32x32xf32>
    %190 = arith.mulf %188, %189 : vector<32x32xf32>
    %c31_i32_81 = arith.constant 31 : i32
    %191 = tpu.dynamic_rotate %185 by %c31_i32_81 dim 0 : vector<32x32xf32>, i32 -> vector<32x32xf32>
    %192 = vector.broadcast %24 : vector<32x1xf32> to vector<32x32xf32>
    %193 = arith.mulf %191, %192 : vector<32x32xf32>
    %194 = tpu.concatenate %190, %185, %193 in 1 : vector<32x32xf32>, vector<32x32xf32>, vector<32x32xf32> -> vector<32x96xf32>
    %cst_82 = arith.constant dense<0.000000e+00> : vector<32x128xf32>
    %195 = tpu.matmul %194, %187, %cst_82 {dimension_numbers = #tpu.dot_dimension_numbers<[1], [0], [0], [1], [0, 0, 1, 1], [], []>} : vector<32x96xf32>, vector<96x128xf32>, vector<32x128xf32> -> vector<32x128xf32>
    %196 = vector.extract_strided_slice %25 {offsets = [8, 0], sizes = [1, 128], strides = [1, 1]} : vector<10x128xf32> to vector<1x128xf32>
    %197 = vector.broadcast %196 : vector<1x128xf32> to vector<32x128xf32>
    %198 = arith.addf %195, %197 : vector<32x128xf32>
    %cst_83 = arith.constant 2.000000e-01 : f32
    %199 = vector.broadcast %cst_83 : f32 to vector<32x128xf32>
    %200 = arith.mulf %199, %198 : vector<32x128xf32>
    %201 = arith.maximumf %198, %200 : vector<32x128xf32>
    %c8 = arith.constant 8 : index
    %c0_84 = arith.constant 0 : index
    %c0_85 = arith.constant 0 : index
    %202 = vector.load %arg5[%c8, %c0_84, %c0_85] : memref<10x32x128xf32, #tpu.memory_space<vmem>>, vector<1x32x128xf32>
    %203 = vector.shape_cast %202 : vector<1x32x128xf32> to vector<32x128xf32>
    %204 = vector.shape_cast %201 : vector<32x128xf32> to vector<1x32x128xf32>
    tpu.vector_store %arg5[%c8, %c0_84, %c0_85], %204 {strides = array<i32>} : memref<10x32x128xf32, #tpu.memory_space<vmem>>, vector<1x32x128xf32>,
    %205 = vector.extract_strided_slice %201 {offsets = [0, 0], sizes = [32, 32], strides = [1, 1]} : vector<32x128xf32> to vector<32x32xf32>
    %c8_86 = arith.constant 8 : index
    %c0_87 = arith.constant 0 : index
    %c0_88 = arith.constant 0 : index
    %206 = vector.load %arg3[%c8_86, %c0_87, %c0_88] : memref<9x96x128xf32, #tpu.memory_space<vmem>>, vector<1x96x128xf32>
    %207 = vector.shape_cast %206 : vector<1x96x128xf32> to vector<96x128xf32>
    %c1_i32_89 = arith.constant 1 : i32
    %208 = tpu.dynamic_rotate %205 by %c1_i32_89 dim 0 : vector<32x32xf32>, i32 -> vector<32x32xf32>
    %209 = vector.broadcast %20 : vector<32x1xf32> to vector<32x32xf32>
    %210 = arith.mulf %208, %209 : vector<32x32xf32>
    %c31_i32_90 = arith.constant 31 : i32
    %211 = tpu.dynamic_rotate %205 by %c31_i32_90 dim 0 : vector<32x32xf32>, i32 -> vector<32x32xf32>
    %212 = vector.broadcast %24 : vector<32x1xf32> to vector<32x32xf32>
    %213 = arith.mulf %211, %212 : vector<32x32xf32>
    %214 = tpu.concatenate %210, %205, %213 in 1 : vector<32x32xf32>, vector<32x32xf32>, vector<32x32xf32> -> vector<32x96xf32>
    %cst_91 = arith.constant dense<0.000000e+00> : vector<32x128xf32>
    %215 = tpu.matmul %214, %207, %cst_91 {dimension_numbers = #tpu.dot_dimension_numbers<[1], [0], [0], [1], [0, 0, 1, 1], [], []>} : vector<32x96xf32>, vector<96x128xf32>, vector<32x128xf32> -> vector<32x128xf32>
    %216 = vector.extract_strided_slice %25 {offsets = [9, 0], sizes = [1, 128], strides = [1, 1]} : vector<10x128xf32> to vector<1x128xf32>
    %217 = vector.broadcast %216 : vector<1x128xf32> to vector<32x128xf32>
    %218 = arith.addf %215, %217 : vector<32x128xf32>
    %c9 = arith.constant 9 : index
    %c0_92 = arith.constant 0 : index
    %c0_93 = arith.constant 0 : index
    %219 = vector.load %arg5[%c9, %c0_92, %c0_93] : memref<10x32x128xf32, #tpu.memory_space<vmem>>, vector<1x32x128xf32>
    %220 = vector.shape_cast %219 : vector<1x32x128xf32> to vector<32x128xf32>
    %221 = vector.shape_cast %218 : vector<32x128xf32> to vector<1x32x128xf32>
    tpu.vector_store %arg5[%c9, %c0_92, %c0_93], %221 {strides = array<i32>} : memref<10x32x128xf32, #tpu.memory_space<vmem>>, vector<1x32x128xf32>,
    return
  }
  func.func @transform_0(%arg0: i32) -> (i32, i32) {
    %c0_i32 = arith.constant 0 : i32
    %c0_i32_0 = arith.constant 0 : i32
    %c0_i32_1 = arith.constant 0 : i32
    return %c0_i32, %c0_i32_0 : i32, i32
  }
  func.func @transform_1(%arg0: i32) -> (i32, i32) {
    %c0_i32 = arith.constant 0 : i32
    %c0_i32_0 = arith.constant 0 : i32
    %c0_i32_1 = arith.constant 0 : i32
    return %c0_i32, %c0_i32_0 : i32, i32
  }
  func.func @transform_2(%arg0: i32) -> (i32, i32, i32) {
    %c0_i32 = arith.constant 0 : i32
    %c0_i32_0 = arith.constant 0 : i32
    %c0_i32_1 = arith.constant 0 : i32
    %c0_i32_2 = arith.constant 0 : i32
    return %c0_i32, %c0_i32_0, %c0_i32_1 : i32, i32, i32
  }
  func.func @transform_3(%arg0: i32) -> (i32, i32) {
    %c0_i32 = arith.constant 0 : i32
    %c0_i32_0 = arith.constant 0 : i32
    %c0_i32_1 = arith.constant 0 : i32
    return %c0_i32, %c0_i32_0 : i32, i32
  }
  func.func @transform_4(%arg0: i32) -> (i32, i32, i32) {
    %c0_i32 = arith.constant 0 : i32
    %c0_i32_0 = arith.constant 0 : i32
    %c0_i32_1 = arith.constant 0 : i32
    %c0_i32_2 = arith.constant 0 : i32
    return %c0_i32, %c0_i32_0, %c0_i32_1 : i32, i32, i32
  }
}

</mosaic_0001>

<bundles_post_ra>
// kernel: discriminator_forward.1
= control target key start
LH: loop header
LB: loop body
LE: loop exit
PB: predicated region body
PF: predicated region fallthrough
CT: control target
= control target key end

     0   :  { %9 = vsyncpa [#allocation3], 0  ;;  %s3516_s0 = inlined_call_operand.vmem [shape: f32[32,64], index: 0, kind: input, shape index: {}]   ;;  %s3517_s1 = inlined_call_operand.hbm [shape: f32[192,128], index: 1, kind: input, shape index: {}]   ;;  %s3518_s2 = inlined_call_operand.hbm [shape: f32[9,96,128], index: 2, kind: input, shape index: {}]   ;;  %s3519_s3 = inlined_call_operand.vmem [shape: f32[10,128], index: 3, kind: input, shape index: {}]   ;;  %s3520_s4 = inlined_call_operand.vmem [shape: f32[10,32,128], index: 4, kind: output, shape index: {}]  }
   0x1   :  { %10 = vsyncpa [#allocation5], 0  ;;  %s2845_s15 = smov [#allocation2]   ;;  %s2797_s19 = scalar_lea.hbm %s3517_s1, 3072 }
   0x2   :  { %s18_s16 = sshll.u32 %s2845_s15, 4  ;;  %p2798_p0 = scmp.ne.s32.totalorder %s3517_s1, %s2797_s19  ;;  %s19_s16 = int_to_ptr.vmem [resolvable:$true] %s18_s16 }
   0x3   :  { %p2801_p1 = scmp.lt.u32.totalorder %s2797_s19, %s3517_s1 }
   0x5   :  { %p2803_p2 = pnand %p2801_p1, %p2798_p0 }
   0x7   :  { %2806 = shalt.err (!%p2803_p2)
}
   0x8   :  { %s2807_s24 = scalar_lea.vmem %s19_s16, 3072  ;;  %p2812_p4 = scmp.lt.s32.totalorder %s19_s16, %s19_s16 }
   0x9   :  { %p2808_p3 = scmp.ne.s32.totalorder %s19_s16, %s2807_s24  ;;  %p2813_p5 = scmp.lt.s32.totalorder %s2807_s24, %s2807_s24 }
   0xb   :  { %p2814_p6 = por %p2813_p5, %p2812_p4 }
   0xd   :  { %p2815_p7 = pnand %p2814_p6, %p2808_p3 }
   0xf   :  { %2818 = shalt.err (!%p2815_p7)
}
  0x10   :  { %s2846_s25 = smov 128   ;;  %s2847_s26 = smov 8  }
  0x11   :  { %24 = dma.hbm_to_vmem [thread:$0]  %s3517_s1, 3072, %s19_s16, [#allocation3], %s2846_s25, %s2846_s25, %s2847_s26  }
  0x12   :  { %s2848_s29 = smov [#allocation4]   ;;  %s2819_s7 = scalar_lea.hbm %s3518_s2, 13824 }
  0x13   :  { %s30_s30 = sshll.u32 %s2848_s29, 4  ;;  %p2820_p8 = scmp.ne.s32.totalorder %s3518_s2, %s2819_s7  ;;  %s31_s30 = int_to_ptr.vmem [resolvable:$true] %s30_s30 }
  0x14   :  { %p2823_p9 = scmp.lt.u32.totalorder %s2819_s7, %s3518_s2 }
  0x16   :  { %p2825_p10 = pnand %p2823_p9, %p2820_p8 }
  0x18   :  { %2828 = shalt.err (!%p2825_p10)
}
  0x19   :  { %s2829_s12 = scalar_lea.vmem %s31_s30, 13824  ;;  %p2834_p12 = scmp.lt.s32.totalorder %s31_s30, %s31_s30 }
  0x1a   :  { %p2830_p11 = scmp.ne.s32.totalorder %s31_s30, %s2829_s12  ;;  %p2835_p13 = scmp.lt.s32.totalorder %s2829_s12, %s2829_s12 }
  0x1c   :  { %p2836_p0 = por %p2835_p13, %p2834_p12 }
  0x1e   :  { %p2837_p1 = pnand %p2836_p0, %p2830_p11 }
  0x20   :  { %2840 = shalt.err (!%p2837_p1)
}
  0x21   :  { %36 = dma.hbm_to_vmem [thread:$0]  %s3518_s2, 13824, %s31_s30, [#allocation5], %s2846_s25, %s2846_s25, %s2847_s26  }
  0x22   :  { %2841 = dma.done.wait [#allocation3], 3072  }
  0x23   :  { %2842 = vsyncadd [#allocation3], 4294964224 }
  0x24   :  { %2843 = dma.done.wait [#allocation5], 13824  }
  0x25   :  { %2844 = vsyncadd [#allocation5], 4294953472  ;;  %v2849_v0 = vmov 0.0|0.0   ;;  %v45_v1 = vlaneseq  ;;  %v124_v3 = vld [vmem:[%s3516_s0] sm:$0xff]  ;;  %v125_v4 = vld [vmem:[%s3516_s0 + $0x8] sm:$0xff]  ;;  %vm194_vm1 = vcmask 523264  }
  0x26   :  { %2524 = vmatprep.subr.bf16.mxu0 %v2849_v0  ;;  %v126_v5 = vld [vmem:[%s3516_s0 + $0x10] sm:$0xff]  ;;  %s2850_s19 = smov 64   ;;  %v152_v6 = vrot.slane %v124_v3, 7  ;;  %v165_v7 = vrot.slane %v124_v3, 1  ;;  %v153_v8 = vrot.slane %v125_v4, 7  ;;  %v166_v9 = vrot.slane %v125_v4, 1 }
  0x27   :  { %v2903_v2 = vshrl.u32 %v45_v1, 7  ;;  %182 = vrot.lane.b32.xlu0 %v124_v3, %s2850_s19  ;;  %186 = vrot.lane.b32.xlu1 %v126_v5, %s2850_s19  ;;  %v127_v10 = vld [vmem:[%s3516_s0 + $0x18] sm:$0xff]  ;;  %v128_v11 = vld [vmem:[#allocation2] sm:$0xff]  ;;  %v167_v12 = vrot.slane %v126_v5, 1  ;;  %v129_v15 = vld [vmem:[#allocation2 + $0x8] sm:$0xff]  ;;  %v154_v16 = vrot.slane %v126_v5, 7 }
  0x28   :  { %v155_v13 = vrot.slane %v127_v10, 7  ;;  %v168_v14 = vrot.slane %v127_v10, 1  ;;  %v2525_v17 = vpack.c.bf16 %v129_v15, %v128_v11  ;;  %v130_v18 = vld [vmem:[#allocation2 + $0x10] sm:$0xff]  ;;  %v131_v19 = vld [vmem:[#allocation2 + $0x18] sm:$0xff]  ;;  %v132_v26 = vld [vmem:[#allocation2 + $0x20] sm:$0xff]  ;;  %v2851_v3 = vmov 0.0  }
  0x29   :  { %vm169_vm0 = vcmp.lt.s32.totalorder %v2903_v2, 7  ;;  %vm156_vm2 = vcmp.lt.s32.totalorder %v2903_v2, 1  ;;  %v2528_v24 = vpack.c.bf16 %v131_v19, %v130_v18  ;;  %v133_v27 = vld [vmem:[#allocation2 + $0x28] sm:$0xff]  ;;  %v134_v32 = vld [vmem:[#allocation2 + $0x30] sm:$0xff]  ;;  %v135_v33 = vld [vmem:[#allocation2 + $0x38] sm:$0xff]  ;;  %v47_v59 = vadd.s32 8, %v2903_v2 }
  0x2a   :  { %v172_v20 = vsel %vm169_vm0, %v165_v7, %v166_v9  ;;  %v2925_v21 = vsel %vm156_vm2, %v152_v6, %v153_v8  ;;  %v2930_v22 = vsel %vm156_vm2, %v155_v13, %v152_v6  ;;  %v2936_v23 = vsel %vm169_vm0, %v166_v9, %v167_v12  ;;  %2526 = vmatpush1.bf16.msra.mxu0 %v2525_v17  ;;  %v136_v35 = vld [vmem:[#allocation2 + $0x40] sm:$0xff]  ;;  %v137_v36 = vld [vmem:[#allocation2 + $0x48] sm:$0xff]  ;;  %v138_v38 = vld [vmem:[#allocation2 + $0x50] sm:$0xff]  ;;  %s2852_s25 = smov 32  }
  0x2b   :  { %2034 = vmatprep.mubr.msk.f32.mxu0 %vm194_vm1, %v172_v20  ;;  %184 = vrot.lane.b32.xlu0 %v125_v4, %s2850_s19  ;;  %v2940_v25 = vsel %vm169_vm0, %v167_v12, %v168_v14  ;;  %v2945_v28 = vsel %vm156_vm2, %v153_v8, %v154_v16  ;;  %v2949_v29 = vsel %vm169_vm0, %v168_v14, %v165_v7  ;;  %v139_v39 = vld [vmem:[#allocation2 + $0x58] sm:$0xff]  ;;  %v140_v41 = vld [vmem:[#allocation2 + $0x60] sm:$0xff]  ;;  %v141_v42 = vld [vmem:[#allocation2 + $0x68] sm:$0xff]  ;;  %v54_v60 = vand.u32 15, %v2903_v2 }
  0x2c   :  { %188 = vrot.lane.b32.xlu1 %v127_v10, %s2850_s19  ;;  %2527 = vmatprep.subr.bf16.mxu0 %v2849_v0  ;;  %v2953_v30 = vsel %vm156_vm2, %v154_v16, %v155_v13  ;;  %v2531_v31 = vpack.c.bf16 %v133_v27, %v132_v26  ;;  %v2534_v34 = vpack.c.bf16 %v135_v33, %v134_v32  ;;  %v142_v44 = vld [vmem:[#allocation2 + $0x70] sm:$0xff]  ;;  %v143_v45 = vld [vmem:[#allocation2 + $0x78] sm:$0xff]  ;;  %v144_v47 = vld [vmem:[#allocation2 + $0x80] sm:$0xff]  ;;  %v61_v61 = vand.u32 15, %v47_v59 }
  0x2d   :  { %v2537_v37 = vpack.c.bf16 %v137_v36, %v136_v35  ;;  %v2540_v40 = vpack.c.bf16 %v139_v39, %v138_v38  ;;  %v2543_v43 = vpack.c.bf16 %v141_v42, %v140_v41  ;;  %v2546_v46 = vpack.c.bf16 %v143_v45, %v142_v44  ;;  %v145_v48 = vld [vmem:[#allocation2 + $0x88] sm:$0xff]  ;;  %v146_v50 = vld [vmem:[#allocation2 + $0x90] sm:$0xff]  ;;  %v147_v51 = vld [vmem:[#allocation2 + $0x98] sm:$0xff] }
  0x2e   :  { %2529 = vmatpush1.bf16.msra.mxu0 %v2528_v24  ;;  %v2549_v49 = vpack.c.bf16 %v145_v48, %v144_v47  ;;  %v2552_v52 = vpack.c.bf16 %v147_v51, %v146_v50  ;;  %v148_v53 = vld [vmem:[#allocation2 + $0xa0] sm:$0xff]  ;;  %v149_v54 = vld [vmem:[#allocation2 + $0xa8] sm:$0xff]  ;;  %v150_v56 = vld [vmem:[#allocation2 + $0xb0] sm:$0xff]  ;;  %v48_v62 = vadd.s32 16, %v2903_v2  ;;  %vm98_vm3 = vcmp.ne.s32.totalorder %v54_v60, 0 }
  0x2f   :  { %2530 = vmatprep.subr.bf16.mxu0 %v2849_v0  ;;  %v2555_v55 = vpack.c.bf16 %v149_v54, %v148_v53  ;;  %v151_v57 = vld [vmem:[#allocation2 + $0xb8] sm:$0xff]  ;;  %vm111_vm4 = vcmp.ne.s32.totalorder %v61_v61, 15  ;;  %v49_v1 = vadd.s32 24, %v2903_v2  ;;  %v2969_v4 = vsel %vm98_vm3, 1.0, %v2851_v3  ;;  %v312_v20 = vld [vmem:[#allocation4] sm:$0xff]  ;;  %v317_v27 = vld [vmem:[#allocation4 + $0x28] sm:$0xff] }
  0x30   :  { %v2558_v58 = vpack.c.bf16 %v151_v57, %v150_v56  ;;  %v68_v63 = vand.u32 15, %v48_v62  ;;  %v2971_v5 = vsel %vm111_vm4, 1.0, %v2851_v3  ;;  %v315_v24 = vld [vmem:[#allocation4 + $0x18] sm:$0xff]  ;;  %v320_v36 = vld [vmem:[#allocation4 + $0x40] sm:$0xff]  ;;  %vm380_vm7 = vcmask 261120  }
  0x31   :  { %v75_v6 = vand.u32 15, %v49_v1  ;;  %v175_v7 = vmul.f32 %v2971_v5, %v2936_v23  ;;  %v319_v32 = vld [vmem:[#allocation4 + $0x38] sm:$0xff]  ;;  %vm393_vm8 = vcmask 785408  }
  0x32   :  { %2532 = vmatpush1.bf16.msra.mxu0 %v2531_v31  ;;  %vm100_vm5 = vcmp.ne.s32.totalorder %v68_v63, 0  ;;  %v318_v31 = vld [vmem:[#allocation4 + $0x30] sm:$0xff]  ;;  %v323_v44 = vld [vmem:[#allocation4 + $0x58] sm:$0xff] }
  0x33   :  { %2533 = vmatprep.subr.bf16.mxu0 %v2849_v0  ;;  %v2977_v9 = vsel %vm100_vm5, 1.0, %v2851_v3  ;;  %vm113_vm6 = vcmp.ne.s32.totalorder %v75_v6, 15 }
  0x34   :  { %v163_v12 = vmul.f32 %v2977_v9, %v2945_v28  ;;  %v2983_v14 = vsel %vm113_vm6, 1.0, %v2851_v3  ;;  %v201_v28 = vsub.s32 0, %v2903_v2 }
  0x35   :  { %v177_v17 = vmul.f32 %v2983_v14, %v2949_v29 }
  0x36   :  { %2535 = vmatpush1.bf16.msra.mxu0 %v2534_v34  ;;  %v2572_v34 = vpack.c.bf16 %v319_v32, %v318_v31 }
  0x37   :  { %2536 = vmatprep.subr.bf16.mxu0 %v2849_v0 }
  0x3a   :  { %2538 = vmatpush1.bf16.msra.mxu0 %v2537_v37  ;;  %v321_v37 = vld [vmem:[#allocation4 + $0x48] sm:$0xff] }
  0x3b   :  { %2539 = vmatprep.subr.bf16.mxu0 %v2849_v0 }
  0x3e   :  { %2541 = vmatpush1.bf16.msra.mxu0 %v2540_v40  ;;  %v2576_v40 = vpack.c.bf16 %v321_v37, %v320_v36 }
  0x3f   :  { %2542 = vmatprep.subr.bf16.mxu0 %v2849_v0 }
  0x42   :  { %2544 = vmatpush1.bf16.msra.mxu0 %v2543_v43  ;;  %v322_v43 = vld [vmem:[#allocation4 + $0x50] sm:$0xff] }
  0x43   :  { %2545 = vmatprep.subr.bf16.mxu0 %v2849_v0  ;;  %v2580_v48 = vpack.c.bf16 %v323_v44, %v322_v43  ;;  %v508_v44 = vld [vmem:[#allocation4 + $0x78] sm:$0xff] }
  0x46   :  { %2547 = vmatpush1.bf16.msra.mxu0 %v2546_v46 }
  0x47   :  { %2548 = vmatprep.subr.bf16.mxu0 %v2849_v0 }
  0x4a   :  { %2550 = vmatpush1.bf16.msra.mxu0 %v2549_v49 }
  0x4b   :  { %2551 = vmatprep.subr.bf16.mxu0 %v2849_v0 }
  0x4e   :  { %2553 = vmatpush1.bf16.msra.mxu0 %v2552_v52 }
  0x4f   :  { %2554 = vmatprep.subr.bf16.mxu0 %v2849_v0 }
  0x52   :  { %2556 = vmatpush1.bf16.msra.mxu0 %v2555_v55 }
  0x53   :  { %2557 = vmatprep.subr.bf16.mxu0 %v2849_v0  ;;  %v161_v0 = vmul.f32 %v2969_v4, %v2930_v22  ;;  %v313_v22 = vld [vmem:[#allocation4 + $0x8] sm:$0xff] }
  0x54   :  { %v2560_v23 = vpack.c.bf16 %v313_v22, %v312_v20 }
  0x56   :  { %2559 = vmatpush1.bf16.msra.mxu0 %v2558_v58  ;;  %2561 = vmatprep.subr.bf16.mxu1 %v2560_v23 }
  0x57   :  { %2563 = vmatpush3.bf16.msra.mxu1 %v2560_v23 }
  0x99   :  { %v183_v8 = vpop.permute.xlu0 %182  ;;  %v187_v11 = vpop.permute.xlu1 %186 }
  0x9a   :  { %v195_v10 = vsel %vm194_vm1, %v161_v0, %v183_v8  ;;  %v197_v16 = vsel %vm194_vm1, %v163_v12, %v187_v11 }
  0x9b   :  { %280 = vmatmul.mubr.f32.vlgmr.msra.gmra.mrb[0].mxu0 %v195_v10 }
  0x9c   :  { %2035 = vmatprep.mubr.msk.f32.mxu0 %vm194_vm1, %v175_v7 }
  0x9d   :  { %v185_v13 = vpop.permute.xlu0 %184 }
  0x9e   :  { %v196_v15 = vsel %vm194_vm1, %v2925_v21, %v185_v13  ;;  %v189_v18 = vpop.permute.xlu1 %188  ;;  %v314_v21 = vld [vmem:[#allocation4 + $0x10] sm:$0xff] }
  0x9f   :  { %285 = vmatmul.mubr.f32.gmra.mrb[2].mxu0 %v196_v15  ;;  %v198_v19 = vsel %vm194_vm1, %v2953_v30, %v189_v18  ;;  %v2564_v26 = vpack.c.bf16 %v315_v24, %v314_v21  ;;  %v2999_v30 = vld [vmem:[%s3519_s3] sm:$0xff] }
  0xa0   :  { %2036 = vmatprep.mubr.msk.f32.mxu0 %vm194_vm1, %v2940_v25  ;;  %v316_v25 = vld [vmem:[#allocation4 + $0x20] sm:$0xff]  ;;  %v202_v33 = vrot.slane %v2999_v30, %v201_v28 }
  0xa1   :  { %2565 = vmatprep.subr.bf16.mxu1 %v2564_v26  ;;  %v2568_v29 = vpack.c.bf16 %v317_v27, %v316_v25 }
  0xa2   :  { %2567 = vmatpush3.bf16.msra.mxu1 %v2564_v26 }
  0xa3   :  { %290 = vmatmul.mubr.f32.gmra.mrb[4].mxu0 %v197_v16  ;;  %2569 = vmatprep.subr.bf16.mxu1 %v2568_v29 }
  0xa4   :  { %2037 = vmatprep.mubr.msk.f32.mxu0 %vm194_vm1, %v177_v17 }
  0xa6   :  { %2571 = vmatpush3.bf16.msra.mxu1 %v2568_v29 }
  0xa7   :  { %295 = vmatmul.mubr.f32.gmra.mrb[6].mxu0 %v198_v19  ;;  %2573 = vmatprep.subr.bf16.mxu1 %v2572_v34 }
  0xaa   :  { %2575 = vmatpush3.bf16.msra.mxu1 %v2572_v34 }
  0xab   :  { %2577 = vmatprep.subr.bf16.mxu1 %v2576_v40 }
  0xae   :  { %2579 = vmatpush3.bf16.msra.mxu1 %v2576_v40  ;;  %v505_v40 = vld [vmem:[#allocation4 + $0x60] sm:$0xff] }
  0xaf   :  { %2581 = vmatprep.subr.bf16.mxu1 %v2580_v48 }
  0xb2   :  { %2583 = vmatpush3.bf16.msra.mxu1 %v2580_v48 }
 0x16e   :  { %v281_v35 = vpop.f32.mrb[0].mxu0 }
 0x16f   :  { %v282_v38 = vadd.f32 %v281_v35, %v202_v33  ;;  %v283_v39 = vpop.f32.mrb[1].mxu0 }
 0x171   :  { %v300_v41 = vmul.f32 0.2, %v282_v38 }
 0x172   :  { %v286_v42 = vpop.f32.mrb[2].mxu0 }
 0x173   :  { %v304_v45 = vmax.f32 %v282_v38, %v300_v41  ;;  %v287_v46 = vadd.f32 %v286_v42, %v202_v33  ;;  %v288_v47 = vpop.f32.mrb[3].mxu0  ;;  %v506_v41 = vld [vmem:[#allocation4 + $0x68] sm:$0xff]  ;;  %v507_v42 = vld [vmem:[#allocation4 + $0x70] sm:$0xff] }
 0x174   :  { %v2584_v43 = vpack.c.bf16 %v506_v41, %v505_v40  ;;  %v510_v47 = vld [vmem:[#allocation4 + $0x88] sm:$0xff] }
 0x175   :  { %308 = vst [vmem:[%s3520_s4] sm:$0xff] %v304_v45  ;;  %v301_v49 = vmul.f32 0.2, %v287_v46  ;;  %352 = vrot.lane.b32.xlu0 %v304_v45, %s2852_s25  ;;  %v324_v54 = vrot.slane %v304_v45, 7  ;;  %v336_v56 = vrot.slane %v304_v45, 1  ;;  %v2588_v45 = vpack.c.bf16 %v508_v44, %v507_v42 }
 0x176   :  { %v291_v50 = vpop.f32.mrb[4].mxu0  ;;  %2585 = vmatprep.subr.bf16.mxu1 %v2584_v43 }
 0x177   :  { %v305_v51 = vmax.f32 %v287_v46, %v301_v49  ;;  %v292_v52 = vadd.f32 %v291_v50, %v202_v33  ;;  %v293_v53 = vpop.f32.mrb[5].mxu0  ;;  %v509_v46 = vld [vmem:[#allocation4 + $0x80] sm:$0xff]  ;;  %v511_v49 = vld [vmem:[#allocation4 + $0x90] sm:$0xff]  ;;  %v512_v50 = vld [vmem:[#allocation4 + $0x98] sm:$0xff] }
 0x178   :  { %v2592_v48 = vpack.c.bf16 %v510_v47, %v509_v46  ;;  %v513_v53 = vld [vmem:[#allocation4 + $0xa0] sm:$0xff] }
 0x179   :  { %309 = vst [vmem:[%s3520_s4 + $0x8] sm:$0xff] %v305_v51  ;;  %v302_v55 = vmul.f32 0.2, %v292_v52  ;;  %354 = vrot.lane.b32.xlu1 %v305_v51, %s2852_s25  ;;  %v337_v57 = vrot.slane %v305_v51, 1  ;;  %v325_v58 = vrot.slane %v305_v51, 7  ;;  %v2596_v51 = vpack.c.bf16 %v512_v50, %v511_v49 }
 0x17a   :  { %v296_v59 = vpop.f32.mrb[6].mxu0 }
 0x17b   :  { %v306_v60 = vmax.f32 %v292_v52, %v302_v55  ;;  %v297_v61 = vadd.f32 %v296_v59, %v202_v33  ;;  %v298_v62 = vpop.f32.mrb[7].mxu0  ;;  %v342_v63 = vsel %vm169_vm0, %v336_v56, %v337_v57  ;;  %v330_v1 = vsel %vm156_vm2, %v324_v54, %v325_v58 }
 0x17c   :  { %368 = vrot.lane.b32.xlu0 %v342_v63, %s2850_s19  ;;  %v391_v52 = vsub.s32 1, %v2903_v2 }
 0x17d   :  { %310 = vst [vmem:[%s3520_s4 + $0x10] sm:$0xff] %v306_v60  ;;  %v326_v3 = vrot.slane %v306_v60, 7  ;;  %v303_v0 = vmul.f32 0.2, %v297_v61  ;;  %v338_v6 = vrot.slane %v306_v60, 1 }
 0x17f   :  { %v307_v7 = vmax.f32 %v297_v61, %v303_v0  ;;  %v341_v8 = vsel %vm169_vm0, %v337_v57, %v338_v6  ;;  %v329_v10 = vsel %vm156_vm2, %v325_v58, %v326_v3  ;;  %v515_v57 = vld [vmem:[#allocation4 + $0xb0] sm:$0xff]  ;;  %v516_v58 = vld [vmem:[#allocation4 + $0xb8] sm:$0xff] }
 0x180   :  { %356 = vrot.lane.b32.xlu0 %v306_v60, %s2852_s25  ;;  %v345_v13 = vmul.f32 %v2971_v5, %v341_v8  ;;  %v334_v29 = vmul.f32 %v2977_v9, %v329_v10  ;;  %v2604_v60 = vpack.c.bf16 %v516_v58, %v515_v57  ;;  %v697_v57 = vld [vmem:[#allocation4 + $0xc8] sm:$0xff]  ;;  %v698_v58 = vld [vmem:[#allocation4 + $0xd0] sm:$0xff] }
 0x181   :  { %311 = vst [vmem:[%s3520_s4 + $0x18] sm:$0xff] %v307_v7  ;;  %v327_v11 = vrot.slane %v307_v7, 7  ;;  %358 = vrot.lane.b32.xlu1 %v307_v7, %s2852_s25  ;;  %v339_v12 = vrot.slane %v307_v7, 1 }
 0x183   :  { %v340_v15 = vsel %vm169_vm0, %v338_v6, %v339_v12  ;;  %v343_v16 = vsel %vm169_vm0, %v339_v12, %v336_v56  ;;  %v331_v17 = vsel %vm156_vm2, %v327_v11, %v324_v54  ;;  %v328_v18 = vsel %vm156_vm2, %v326_v3, %v327_v11  ;;  %v514_v54 = vld [vmem:[#allocation4 + $0xa8] sm:$0xff] }
 0x184   :  { %372 = vrot.lane.b32.xlu0 %v340_v15, %s2850_s19  ;;  %v347_v19 = vmul.f32 %v2983_v14, %v343_v16  ;;  %v332_v22 = vmul.f32 %v2969_v4, %v331_v17  ;;  %v2600_v55 = vpack.c.bf16 %v514_v54, %v513_v53  ;;  %v392_v56 = vrot.slane %v2999_v30, %v391_v52 }
 0x185   :  { %370 = vrot.lane.b32.xlu1 %v345_v13, %s2850_s19 }
 0x189   :  { %374 = vrot.lane.b32.xlu1 %v347_v19, %s2850_s19 }
 0x1e7   :  { %v353_v20 = vpop.permute.xlu0 %352 }
 0x1e8   :  { %v381_v21 = vsel %vm380_vm7, %v332_v22, %v353_v20 }
 0x1eb   :  { %v355_v24 = vpop.permute.xlu1 %354 }
 0x1ec   :  { %v382_v32 = vsel %vm380_vm7, %v330_v1, %v355_v24 }
 0x1ee   :  { %v369_v23 = vpop.permute.xlu0 %368 }
 0x1ef   :  { %v385_v26 = vsel %vm194_vm1, %v381_v21, %v369_v23 }
 0x1f0   :  { %2278 = vmatprep.mubr.msk.f32.mxu1 %vm393_vm8, %v385_v26 }
 0x1f2   :  { %v357_v25 = vpop.permute.xlu0 %356 }
 0x1f3   :  { %v359_v27 = vpop.permute.xlu1 %358  ;;  %v383_v34 = vsel %vm380_vm7, %v334_v29, %v357_v25 }
 0x1f4   :  { %v384_v37 = vsel %vm380_vm7, %v328_v18, %v359_v27 }
 0x1f6   :  { %v373_v31 = vpop.permute.xlu0 %372 }
 0x1f7   :  { %v371_v33 = vpop.permute.xlu1 %370  ;;  %v387_v36 = vsel %vm194_vm1, %v383_v34, %v373_v31 }
 0x1f8   :  { %v386_v35 = vsel %vm194_vm1, %v382_v32, %v371_v33 }
 0x1f9   :  { %2279 = vmatmul.mubr.msk.f32.vlgmr.msra.gmra.mrb[0].mxu1 %vm393_vm8, %v386_v35 }
 0x1fa   :  { %2281 = vmatprep.mubr.msk.f32.mxu1 %vm393_vm8, %v387_v36  ;;  %2587 = vmatpush3.bf16.msra.mxu1 %v2584_v43 }
 0x1fb   :  { %v375_v38 = vpop.permute.xlu1 %374  ;;  %2589 = vmatprep.subr.bf16.mxu1 %v2588_v45 }
 0x1fc   :  { %v388_v39 = vsel %vm194_vm1, %v384_v37, %v375_v38 }
 0x1fd   :  { %2282 = vmatmul.mubr.msk.f32.gmra.mrb[2].mxu1 %vm393_vm8, %v388_v39 }
 0x1fe   :  { %2591 = vmatpush3.bf16.msra.mxu1 %v2588_v45 }
 0x1ff   :  { %2593 = vmatprep.subr.bf16.mxu1 %v2592_v48 }
 0x202   :  { %2595 = vmatpush3.bf16.msra.mxu1 %v2592_v48 }
 0x203   :  { %2597 = vmatprep.subr.bf16.mxu1 %v2596_v51 }
 0x206   :  { %2599 = vmatpush3.bf16.msra.mxu1 %v2596_v51 }
 0x207   :  { %2601 = vmatprep.subr.bf16.mxu1 %v2600_v55 }
 0x20a   :  { %2603 = vmatpush3.bf16.msra.mxu1 %v2600_v55 }
 0x20b   :  { %2605 = vmatprep.subr.bf16.mxu1 %v2604_v60 }
 0x20e   :  { %2607 = vmatpush3.bf16.msra.mxu1 %v2604_v60  ;;  %v699_v60 = vld [vmem:[#allocation4 + $0xd8] sm:$0xff] }
 0x2cc   :  { %v2280_v59 = vpop.f32.mrb[0].mxu1 }
 0x2cd   :  { %v478_v61 = vadd.f32 %v2280_v59, %v392_v56  ;;  %v472_v62 = vpop.f32.mrb[1].mxu1 }
 0x2ce   :  { %v473_v63 = vadd.f32 %v472_v62, %v392_v56  ;;  %v700_v62 = vld [vmem:[#allocation4 + $0xe0] sm:$0xff] }
 0x2cf   :  { %v492_v1 = vmul.f32 0.2, %v478_v61 }
 0x2d0   :  { %v491_v3 = vmul.f32 0.2, %v473_v63  ;;  %v2283_v0 = vpop.f32.mrb[2].mxu1 }
 0x2d1   :  { %v496_v6 = vmax.f32 %v478_v61, %v492_v1  ;;  %v488_v7 = vadd.f32 %v2283_v0, %v392_v56  ;;  %v482_v8 = vpop.f32.mrb[3].mxu1  ;;  %v2612_v61 = vpack.c.bf16 %v699_v60, %v698_v58  ;;  %v703_v0 = vld [vmem:[#allocation4 + $0xf8] sm:$0xff] }
 0x2d2   :  { %v495_v10 = vmax.f32 %v473_v63, %v491_v3  ;;  %v483_v11 = vadd.f32 %v482_v8, %v392_v56  ;;  %v696_v56 = vld [vmem:[#allocation4 + $0xc0] sm:$0xff]  ;;  %v701_v63 = vld [vmem:[#allocation4 + $0xe8] sm:$0xff]  ;;  %v702_v3 = vld [vmem:[#allocation4 + $0xf0] sm:$0xff] }
 0x2d3   :  { %2043 = vst [vmem:[%s3520_s4 + $0x28] sm:$0xff] %v496_v6  ;;  %v494_v12 = vmul.f32 0.2, %v488_v7  ;;  %547 = vrot.lane.b32.xlu1 %v496_v6, %s2852_s25  ;;  %v530_v13 = vrot.slane %v496_v6, 1  ;;  %v518_v15 = vrot.slane %v496_v6, 7  ;;  %v2608_v59 = vpack.c.bf16 %v697_v57, %v696_v56  ;;  %v704_v8 = vld [vmem:[#allocation4 + $0x100] sm:$0xff] }
 0x2d4   :  { %2042 = vst [vmem:[%s3520_s4 + $0x20] sm:$0xff] %v495_v10  ;;  %v493_v16 = vmul.f32 0.2, %v483_v11  ;;  %545 = vrot.lane.b32.xlu0 %v495_v10, %s2852_s25  ;;  %v529_v17 = vrot.slane %v495_v10, 1  ;;  %v517_v18 = vrot.slane %v495_v10, 7  ;;  %v2616_v1 = vpack.c.bf16 %v701_v63, %v700_v62  ;;  %v705_v10 = vld [vmem:[#allocation4 + $0x108] sm:$0xff] }
 0x2d5   :  { %v498_v19 = vmax.f32 %v488_v7, %v494_v12  ;;  %2609 = vmatprep.subr.bf16.mxu0 %v2608_v59  ;;  %v2620_v6 = vpack.c.bf16 %v703_v0, %v702_v3  ;;  %v583_v7 = vsub.s32 2, %v2903_v2 }
 0x2d6   :  { %v497_v20 = vmax.f32 %v483_v11, %v493_v16  ;;  %v535_v22 = vsel %vm169_vm0, %v529_v17, %v530_v13  ;;  %v523_v21 = vsel %vm156_vm2, %v517_v18, %v518_v15  ;;  %2611 = vmatpush3.bf16.msra.mxu0 %v2608_v59  ;;  %v2624_v11 = vpack.c.bf16 %v705_v10, %v704_v8 }
 0x2d7   :  { %2045 = vst [vmem:[%s3520_s4 + $0x38] sm:$0xff] %v498_v19  ;;  %v520_v23 = vrot.slane %v498_v19, 7  ;;  %551 = vrot.lane.b32.xlu1 %v498_v19, %s2852_s25  ;;  %v532_v24 = vrot.slane %v498_v19, 1  ;;  %2613 = vmatprep.subr.bf16.mxu0 %v2612_v61  ;;  %v584_v12 = vrot.slane %v2999_v30, %v583_v7 }
 0x2d8   :  { %2044 = vst [vmem:[%s3520_s4 + $0x30] sm:$0xff] %v497_v20  ;;  %561 = vrot.lane.b32.xlu0 %v535_v22, %s2850_s19  ;;  %v531_v26 = vrot.slane %v497_v20, 1  ;;  %v519_v25 = vrot.slane %v497_v20, 7 }
 0x2d9   :  { %v536_v27 = vsel %vm169_vm0, %v532_v24, %v529_v17  ;;  %v524_v29 = vsel %vm156_vm2, %v520_v23, %v517_v18 }
 0x2da   :  { %v534_v31 = vsel %vm169_vm0, %v530_v13, %v531_v26  ;;  %v533_v32 = vsel %vm169_vm0, %v531_v26, %v532_v24  ;;  %v521_v34 = vsel %vm156_vm2, %v519_v25, %v520_v23  ;;  %v522_v35 = vsel %vm156_vm2, %v518_v15, %v519_v25  ;;  %2615 = vmatpush3.bf16.msra.mxu0 %v2612_v61  ;;  %v706_v13 = vld [vmem:[#allocation4 + $0x110] sm:$0xff]  ;;  %v707_v15 = vld [vmem:[#allocation4 + $0x118] sm:$0xff] }
 0x2db   :  { %v538_v33 = vmul.f32 %v2971_v5, %v534_v31  ;;  %v540_v36 = vmul.f32 %v2983_v14, %v536_v27  ;;  %v525_v39 = vmul.f32 %v2969_v4, %v524_v29  ;;  %v527_v47 = vmul.f32 %v2977_v9, %v522_v35  ;;  %2617 = vmatprep.subr.bf16.mxu0 %v2616_v1 }
 0x2dc   :  { %549 = vrot.lane.b32.xlu0 %v497_v20, %s2852_s25  ;;  %v2628_v17 = vpack.c.bf16 %v707_v15, %v706_v13  ;;  %v888_v13 = vld [vmem:[#allocation4 + $0x128] sm:$0xff]  ;;  %v889_v15 = vld [vmem:[#allocation4 + $0x130] sm:$0xff] }
 0x2dd   :  { %563 = vrot.lane.b32.xlu1 %v538_v33, %s2850_s19 }
 0x2de   :  { %2619 = vmatpush3.bf16.msra.mxu0 %v2616_v1 }
 0x2df   :  { %2621 = vmatprep.subr.bf16.mxu0 %v2620_v6 }
 0x2e0   :  { %565 = vrot.lane.b32.xlu0 %v533_v32, %s2850_s19 }
 0x2e1   :  { %567 = vrot.lane.b32.xlu1 %v540_v36, %s2850_s19 }
 0x2e2   :  { %2623 = vmatpush3.bf16.msra.mxu0 %v2620_v6 }
 0x2e3   :  { %2625 = vmatprep.subr.bf16.mxu0 %v2624_v11 }
 0x2e6   :  { %2627 = vmatpush3.bf16.msra.mxu0 %v2624_v11 }
 0x2e7   :  { %2629 = vmatprep.subr.bf16.mxu0 %v2628_v17 }
 0x2ea   :  { %2631 = vmatpush3.bf16.msra.mxu0 %v2628_v17  ;;  %v890_v17 = vld [vmem:[#allocation4 + $0x138] sm:$0xff] }
 0x345   :  { %v548_v37 = vpop.permute.xlu1 %547 }
 0x346   :  { %v546_v38 = vpop.permute.xlu0 %545  ;;  %v574_v45 = vsel %vm380_vm7, %v523_v21, %v548_v37 }
 0x347   :  { %v573_v40 = vsel %vm380_vm7, %v525_v39, %v546_v38 }
 0x349   :  { %v552_v42 = vpop.permute.xlu1 %551 }
 0x34a   :  { %v562_v41 = vpop.permute.xlu0 %561  ;;  %v576_v51 = vsel %vm380_vm7, %v521_v34, %v552_v42 }
 0x34b   :  { %v577_v43 = vsel %vm194_vm1, %v573_v40, %v562_v41 }
 0x34c   :  { %2308 = vmatprep.mubr.msk.f32.mxu1 %vm393_vm8, %v577_v43 }
 0x34e   :  { %v550_v44 = vpop.permute.xlu0 %549 }
 0x34f   :  { %v564_v46 = vpop.permute.xlu1 %563  ;;  %v575_v49 = vsel %vm380_vm7, %v527_v47, %v550_v44 }
 0x350   :  { %v578_v48 = vsel %vm194_vm1, %v574_v45, %v564_v46 }
 0x351   :  { %2309 = vmatmul.mubr.msk.f32.vlgmr.msra.gmra.mrb[4].mxu1 %vm393_vm8, %v578_v48 }
 0x352   :  { %v566_v50 = vpop.permute.xlu0 %565 }
 0x353   :  { %v579_v53 = vsel %vm194_vm1, %v575_v49, %v566_v50  ;;  %v568_v54 = vpop.permute.xlu1 %567 }
 0x354   :  { %v580_v55 = vsel %vm194_vm1, %v576_v51, %v568_v54  ;;  %2311 = vmatprep.mubr.msk.f32.mxu1 %vm393_vm8, %v579_v53 }
 0x355   :  { %2312 = vmatmul.mubr.msk.f32.gmra.mrb[6].mxu1 %vm393_vm8, %v580_v55 }
 0x424   :  { %v2310_v16 = vpop.f32.mrb[4].mxu1 }
 0x425   :  { %v669_v18 = vadd.f32 %v2310_v16, %v584_v12  ;;  %v663_v19 = vpop.f32.mrb[5].mxu1 }
 0x426   :  { %v664_v20 = vadd.f32 %v663_v19, %v584_v12  ;;  %v891_v19 = vld [vmem:[#allocation4 + $0x140] sm:$0xff] }
 0x427   :  { %v683_v22 = vmul.f32 0.2, %v669_v18 }
 0x428   :  { %v682_v21 = vmul.f32 0.2, %v664_v20  ;;  %v2313_v23 = vpop.f32.mrb[6].mxu1 }
 0x429   :  { %v687_v24 = vmax.f32 %v669_v18, %v683_v22  ;;  %v679_v26 = vadd.f32 %v2313_v23, %v584_v12  ;;  %v673_v25 = vpop.f32.mrb[7].mxu1  ;;  %v2636_v18 = vpack.c.bf16 %v890_v17, %v889_v15  ;;  %v894_v23 = vld [vmem:[#allocation4 + $0x158] sm:$0xff] }
 0x42a   :  { %v686_v27 = vmax.f32 %v664_v20, %v682_v21  ;;  %v674_v29 = vadd.f32 %v673_v25, %v584_v12  ;;  %v887_v12 = vld [vmem:[#allocation4 + $0x120] sm:$0xff]  ;;  %v892_v20 = vld [vmem:[#allocation4 + $0x148] sm:$0xff]  ;;  %v893_v21 = vld [vmem:[#allocation4 + $0x150] sm:$0xff] }
 0x42b   :  { %2051 = vst [vmem:[%s3520_s4 + $0x48] sm:$0xff] %v687_v24  ;;  %v685_v31 = vmul.f32 0.2, %v679_v26  ;;  %738 = vrot.lane.b32.xlu1 %v687_v24, %s2852_s25  ;;  %v721_v32 = vrot.slane %v687_v24, 1  ;;  %v709_v33 = vrot.slane %v687_v24, 7  ;;  %v2632_v16 = vpack.c.bf16 %v888_v13, %v887_v12  ;;  %v895_v25 = vld [vmem:[#allocation4 + $0x160] sm:$0xff] }
 0x42c   :  { %2050 = vst [vmem:[%s3520_s4 + $0x40] sm:$0xff] %v686_v27  ;;  %v684_v34 = vmul.f32 0.2, %v674_v29  ;;  %736 = vrot.lane.b32.xlu0 %v686_v27, %s2852_s25  ;;  %v720_v35 = vrot.slane %v686_v27, 1  ;;  %v708_v36 = vrot.slane %v686_v27, 7  ;;  %v2640_v22 = vpack.c.bf16 %v892_v20, %v891_v19  ;;  %v896_v27 = vld [vmem:[#allocation4 + $0x168] sm:$0xff] }
 0x42d   :  { %v689_v37 = vmax.f32 %v679_v26, %v685_v31  ;;  %2633 = vmatprep.subr.bf16.mxu1 %v2632_v16  ;;  %v2644_v24 = vpack.c.bf16 %v894_v23, %v893_v21  ;;  %v774_v26 = vsub.s32 3, %v2903_v2 }
 0x42e   :  { %v688_v38 = vmax.f32 %v674_v29, %v684_v34  ;;  %v726_v39 = vsel %vm169_vm0, %v720_v35, %v721_v32  ;;  %v714_v40 = vsel %vm156_vm2, %v708_v36, %v709_v33  ;;  %2635 = vmatpush3.bf16.msra.mxu1 %v2632_v16  ;;  %v2648_v29 = vpack.c.bf16 %v896_v27, %v895_v25 }
 0x42f   :  { %2053 = vst [vmem:[%s3520_s4 + $0x58] sm:$0xff] %v689_v37  ;;  %v711_v41 = vrot.slane %v689_v37, 7  ;;  %742 = vrot.lane.b32.xlu1 %v689_v37, %s2852_s25  ;;  %v723_v42 = vrot.slane %v689_v37, 1  ;;  %2637 = vmatprep.subr.bf16.mxu1 %v2636_v18  ;;  %v775_v31 = vrot.slane %v2999_v30, %v774_v26 }
 0x430   :  { %2052 = vst [vmem:[%s3520_s4 + $0x50] sm:$0xff] %v688_v38  ;;  %752 = vrot.lane.b32.xlu0 %v726_v39, %s2850_s19  ;;  %v722_v43 = vrot.slane %v688_v38, 1  ;;  %v710_v44 = vrot.slane %v688_v38, 7 }
 0x431   :  { %v727_v45 = vsel %vm169_vm0, %v723_v42, %v720_v35  ;;  %v715_v46 = vsel %vm156_vm2, %v711_v41, %v708_v36 }
 0x432   :  { %v725_v47 = vsel %vm169_vm0, %v721_v32, %v722_v43  ;;  %v724_v48 = vsel %vm169_vm0, %v722_v43, %v723_v42  ;;  %v712_v50 = vsel %vm156_vm2, %v710_v44, %v711_v41  ;;  %v713_v51 = vsel %vm156_vm2, %v709_v33, %v710_v44  ;;  %2639 = vmatpush3.bf16.msra.mxu1 %v2636_v18  ;;  %v897_v32 = vld [vmem:[#allocation4 + $0x170] sm:$0xff]  ;;  %v898_v33 = vld [vmem:[#allocation4 + $0x178] sm:$0xff] }
 0x433   :  { %v729_v49 = vmul.f32 %v2971_v5, %v725_v47  ;;  %v731_v53 = vmul.f32 %v2983_v14, %v727_v45  ;;  %v716_v56 = vmul.f32 %v2969_v4, %v715_v46  ;;  %v718_v1 = vmul.f32 %v2977_v9, %v713_v51  ;;  %2641 = vmatprep.subr.bf16.mxu1 %v2640_v22 }
 0x434   :  { %740 = vrot.lane.b32.xlu0 %v688_v38, %s2852_s25  ;;  %v2652_v35 = vpack.c.bf16 %v898_v33, %v897_v32  ;;  %v1079_v32 = vld [vmem:[#allocation4 + $0x188] sm:$0xff]  ;;  %v1080_v33 = vld [vmem:[#allocation4 + $0x190] sm:$0xff] }
 0x435   :  { %754 = vrot.lane.b32.xlu1 %v729_v49, %s2850_s19 }
 0x436   :  { %2643 = vmatpush3.bf16.msra.mxu1 %v2640_v22 }
 0x437   :  { %2645 = vmatprep.subr.bf16.mxu1 %v2644_v24 }
 0x438   :  { %756 = vrot.lane.b32.xlu0 %v724_v48, %s2850_s19 }
 0x439   :  { %758 = vrot.lane.b32.xlu1 %v731_v53, %s2850_s19 }
 0x43a   :  { %2647 = vmatpush3.bf16.msra.mxu1 %v2644_v24 }
 0x43b   :  { %2649 = vmatprep.subr.bf16.mxu1 %v2648_v29 }
 0x43e   :  { %2651 = vmatpush3.bf16.msra.mxu1 %v2648_v29 }
 0x43f   :  { %2653 = vmatprep.subr.bf16.mxu1 %v2652_v35 }
 0x442   :  { %2655 = vmatpush3.bf16.msra.mxu1 %v2652_v35  ;;  %v1081_v35 = vld [vmem:[#allocation4 + $0x198] sm:$0xff] }
 0x49d   :  { %v739_v54 = vpop.permute.xlu1 %738 }
 0x49e   :  { %v737_v55 = vpop.permute.xlu0 %736  ;;  %v765_v62 = vsel %vm380_vm7, %v714_v40, %v739_v54 }
 0x49f   :  { %v764_v57 = vsel %vm380_vm7, %v716_v56, %v737_v55 }
 0x4a1   :  { %v743_v59 = vpop.permute.xlu1 %742 }
 0x4a2   :  { %v753_v58 = vpop.permute.xlu0 %752  ;;  %v767_v7 = vsel %vm380_vm7, %v712_v50, %v743_v59 }
 0x4a3   :  { %v768_v60 = vsel %vm194_vm1, %v764_v57, %v753_v58 }
 0x4a4   :  { %2338 = vmatprep.mubr.msk.f32.mxu0 %vm393_vm8, %v768_v60 }
 0x4a6   :  { %v741_v61 = vpop.permute.xlu0 %740 }
 0x4a7   :  { %v755_v63 = vpop.permute.xlu1 %754  ;;  %v766_v0 = vsel %vm380_vm7, %v718_v1, %v741_v61 }
 0x4a8   :  { %v769_v3 = vsel %vm194_vm1, %v765_v62, %v755_v63 }
 0x4a9   :  { %2339 = vmatmul.mubr.msk.f32.vlgmr.msra.gmra.mrb[8].mxu0 %vm393_vm8, %v769_v3 }
 0x4aa   :  { %v757_v6 = vpop.permute.xlu0 %756 }
 0x4ab   :  { %v770_v8 = vsel %vm194_vm1, %v766_v0, %v757_v6  ;;  %v759_v10 = vpop.permute.xlu1 %758 }
 0x4ac   :  { %v771_v11 = vsel %vm194_vm1, %v767_v7, %v759_v10  ;;  %2341 = vmatprep.mubr.msk.f32.mxu0 %vm393_vm8, %v770_v8 }
 0x4ad   :  { %2342 = vmatmul.mubr.msk.f32.gmra.mrb[10].mxu0 %vm393_vm8, %v771_v11 }
 0x57c   :  { %v2340_v34 = vpop.f32.mrb[8].mxu0 }
 0x57d   :  { %v860_v36 = vadd.f32 %v2340_v34, %v775_v31  ;;  %v854_v37 = vpop.f32.mrb[9].mxu0 }
 0x57e   :  { %v855_v38 = vadd.f32 %v854_v37, %v775_v31  ;;  %v1082_v37 = vld [vmem:[#allocation4 + $0x1a0] sm:$0xff] }
 0x57f   :  { %v874_v39 = vmul.f32 0.2, %v860_v36 }
 0x580   :  { %v873_v40 = vmul.f32 0.2, %v855_v38  ;;  %v2343_v41 = vpop.f32.mrb[10].mxu0 }
 0x581   :  { %v878_v42 = vmax.f32 %v860_v36, %v874_v39  ;;  %v870_v43 = vadd.f32 %v2343_v41, %v775_v31  ;;  %v864_v44 = vpop.f32.mrb[11].mxu0  ;;  %v2660_v36 = vpack.c.bf16 %v1081_v35, %v1080_v33  ;;  %v1085_v41 = vld [vmem:[#allocation4 + $0x1b8] sm:$0xff] }
 0x582   :  { %v877_v45 = vmax.f32 %v855_v38, %v873_v40  ;;  %v865_v46 = vadd.f32 %v864_v44, %v775_v31  ;;  %v1078_v31 = vld [vmem:[#allocation4 + $0x180] sm:$0xff]  ;;  %v1083_v38 = vld [vmem:[#allocation4 + $0x1a8] sm:$0xff]  ;;  %v1084_v40 = vld [vmem:[#allocation4 + $0x1b0] sm:$0xff] }
 0x583   :  { %2059 = vst [vmem:[%s3520_s4 + $0x68] sm:$0xff] %v878_v42  ;;  %v876_v47 = vmul.f32 0.2, %v870_v43  ;;  %929 = vrot.lane.b32.xlu1 %v878_v42, %s2852_s25  ;;  %v912_v48 = vrot.slane %v878_v42, 1  ;;  %v900_v49 = vrot.slane %v878_v42, 7  ;;  %v2656_v34 = vpack.c.bf16 %v1079_v32, %v1078_v31  ;;  %v1086_v44 = vld [vmem:[#allocation4 + $0x1c0] sm:$0xff] }
 0x584   :  { %2058 = vst [vmem:[%s3520_s4 + $0x60] sm:$0xff] %v877_v45  ;;  %v875_v50 = vmul.f32 0.2, %v865_v46  ;;  %927 = vrot.lane.b32.xlu0 %v877_v45, %s2852_s25  ;;  %v911_v51 = vrot.slane %v877_v45, 1  ;;  %v899_v53 = vrot.slane %v877_v45, 7  ;;  %v2664_v39 = vpack.c.bf16 %v1083_v38, %v1082_v37  ;;  %v1087_v45 = vld [vmem:[#allocation4 + $0x1c8] sm:$0xff] }
 0x585   :  { %v880_v54 = vmax.f32 %v870_v43, %v876_v47  ;;  %2657 = vmatprep.subr.bf16.mxu0 %v2656_v34  ;;  %v2668_v42 = vpack.c.bf16 %v1085_v41, %v1084_v40  ;;  %v965_v43 = vsub.s32 4, %v2903_v2 }
 0x586   :  { %v879_v55 = vmax.f32 %v865_v46, %v875_v50  ;;  %v917_v56 = vsel %vm169_vm0, %v911_v51, %v912_v48  ;;  %v905_v57 = vsel %vm156_vm2, %v899_v53, %v900_v49  ;;  %2659 = vmatpush3.bf16.msra.mxu0 %v2656_v34  ;;  %v2672_v46 = vpack.c.bf16 %v1087_v45, %v1086_v44 }
 0x587   :  { %2061 = vst [vmem:[%s3520_s4 + $0x78] sm:$0xff] %v880_v54  ;;  %v902_v58 = vrot.slane %v880_v54, 7  ;;  %933 = vrot.lane.b32.xlu1 %v880_v54, %s2852_s25  ;;  %v914_v59 = vrot.slane %v880_v54, 1  ;;  %2661 = vmatprep.subr.bf16.mxu0 %v2660_v36  ;;  %v966_v47 = vrot.slane %v2999_v30, %v965_v43 }
 0x588   :  { %2060 = vst [vmem:[%s3520_s4 + $0x70] sm:$0xff] %v879_v55  ;;  %943 = vrot.lane.b32.xlu0 %v917_v56, %s2850_s19  ;;  %v913_v60 = vrot.slane %v879_v55, 1  ;;  %v901_v61 = vrot.slane %v879_v55, 7 }
 0x589   :  { %v918_v62 = vsel %vm169_vm0, %v914_v59, %v911_v51  ;;  %v906_v63 = vsel %vm156_vm2, %v902_v58, %v899_v53 }
 0x58a   :  { %v916_v1 = vsel %vm169_vm0, %v912_v48, %v913_v60  ;;  %v915_v3 = vsel %vm169_vm0, %v913_v60, %v914_v59  ;;  %v903_v6 = vsel %vm156_vm2, %v901_v61, %v902_v58  ;;  %v904_v7 = vsel %vm156_vm2, %v900_v49, %v901_v61  ;;  %2663 = vmatpush3.bf16.msra.mxu0 %v2660_v36  ;;  %v1088_v48 = vld [vmem:[#allocation4 + $0x1d0] sm:$0xff]  ;;  %v1089_v49 = vld [vmem:[#allocation4 + $0x1d8] sm:$0xff] }
 0x58b   :  { %v920_v0 = vmul.f32 %v2971_v5, %v916_v1  ;;  %v922_v8 = vmul.f32 %v2983_v14, %v918_v62  ;;  %v907_v12 = vmul.f32 %v2969_v4, %v906_v63  ;;  %v909_v22 = vmul.f32 %v2977_v9, %v904_v7  ;;  %2665 = vmatprep.subr.bf16.mxu0 %v2664_v39 }
 0x58c   :  { %931 = vrot.lane.b32.xlu0 %v879_v55, %s2852_s25  ;;  %v2676_v51 = vpack.c.bf16 %v1089_v49, %v1088_v48  ;;  %v1271_v48 = vld [vmem:[#allocation4 + $0x1f0] sm:$0xff] }
 0x58d   :  { %945 = vrot.lane.b32.xlu1 %v920_v0, %s2850_s19 }
 0x58e   :  { %2667 = vmatpush3.bf16.msra.mxu0 %v2664_v39 }
 0x58f   :  { %2669 = vmatprep.subr.bf16.mxu0 %v2668_v42 }
 0x590   :  { %947 = vrot.lane.b32.xlu0 %v915_v3, %s2850_s19 }
 0x591   :  { %949 = vrot.lane.b32.xlu1 %v922_v8, %s2850_s19 }
 0x592   :  { %2671 = vmatpush3.bf16.msra.mxu0 %v2668_v42 }
 0x593   :  { %2673 = vmatprep.subr.bf16.mxu0 %v2672_v46 }
 0x596   :  { %2675 = vmatpush3.bf16.msra.mxu0 %v2672_v46  ;;  %v1269_v46 = vld [vmem:[#allocation4 + $0x1e0] sm:$0xff] }
 0x597   :  { %2677 = vmatprep.subr.bf16.mxu0 %v2676_v51 }
 0x59a   :  { %2679 = vmatpush3.bf16.msra.mxu0 %v2676_v51 }
 0x5f5   :  { %v930_v10 = vpop.permute.xlu1 %929 }
 0x5f6   :  { %v928_v11 = vpop.permute.xlu0 %927  ;;  %v956_v19 = vsel %vm380_vm7, %v905_v57, %v930_v10 }
 0x5f7   :  { %v955_v13 = vsel %vm380_vm7, %v907_v12, %v928_v11 }
 0x5f9   :  { %v934_v16 = vpop.permute.xlu1 %933 }
 0x5fa   :  { %v944_v15 = vpop.permute.xlu0 %943  ;;  %v958_v26 = vsel %vm380_vm7, %v903_v6, %v934_v16 }
 0x5fb   :  { %v959_v17 = vsel %vm194_vm1, %v955_v13, %v944_v15 }
 0x5fc   :  { %2368 = vmatprep.mubr.msk.f32.mxu1 %vm393_vm8, %v959_v17 }
 0x5fe   :  { %v932_v18 = vpop.permute.xlu0 %931 }
 0x5ff   :  { %v946_v20 = vpop.permute.xlu1 %945  ;;  %v957_v23 = vsel %vm380_vm7, %v909_v22, %v932_v18 }
 0x600   :  { %v960_v21 = vsel %vm194_vm1, %v956_v19, %v946_v20 }
 0x601   :  { %2369 = vmatmul.mubr.msk.f32.vlgmr.msra.gmra.mrb[8].mxu1 %vm393_vm8, %v960_v21 }
 0x602   :  { %v948_v24 = vpop.permute.xlu0 %947 }
 0x603   :  { %v961_v25 = vsel %vm194_vm1, %v957_v23, %v948_v24  ;;  %v950_v27 = vpop.permute.xlu1 %949 }
 0x604   :  { %v962_v29 = vsel %vm194_vm1, %v958_v26, %v950_v27  ;;  %2371 = vmatprep.mubr.msk.f32.mxu1 %vm393_vm8, %v961_v25 }
 0x605   :  { %2372 = vmatmul.mubr.msk.f32.gmra.mrb[10].mxu1 %vm393_vm8, %v962_v29 }
 0x6d4   :  { %v2370_v50 = vpop.f32.mrb[8].mxu1 }
 0x6d5   :  { %v1051_v53 = vadd.f32 %v2370_v50, %v966_v47  ;;  %v1045_v54 = vpop.f32.mrb[9].mxu1  ;;  %v1272_v50 = vld [vmem:[#allocation4 + $0x1f8] sm:$0xff] }
 0x6d6   :  { %v1046_v55 = vadd.f32 %v1045_v54, %v966_v47  ;;  %v2684_v51 = vpack.c.bf16 %v1272_v50, %v1271_v48  ;;  %v1274_v54 = vld [vmem:[#allocation4 + $0x208] sm:$0xff] }
 0x6d7   :  { %v1065_v56 = vmul.f32 0.2, %v1051_v53 }
 0x6d8   :  { %v1064_v57 = vmul.f32 0.2, %v1046_v55  ;;  %v2373_v58 = vpop.f32.mrb[10].mxu1 }
 0x6d9   :  { %v1069_v59 = vmax.f32 %v1051_v53, %v1065_v56  ;;  %v1061_v60 = vadd.f32 %v2373_v58, %v966_v47  ;;  %v1055_v61 = vpop.f32.mrb[11].mxu1  ;;  %v1273_v53 = vld [vmem:[#allocation4 + $0x200] sm:$0xff]  ;;  %v1275_v56 = vld [vmem:[#allocation4 + $0x210] sm:$0xff] }
 0x6da   :  { %v1068_v62 = vmax.f32 %v1046_v55, %v1064_v57  ;;  %v1056_v63 = vadd.f32 %v1055_v61, %v966_v47  ;;  %v1270_v47 = vld [vmem:[#allocation4 + $0x1e8] sm:$0xff]  ;;  %v2688_v55 = vpack.c.bf16 %v1274_v54, %v1273_v53  ;;  %v1276_v57 = vld [vmem:[#allocation4 + $0x218] sm:$0xff] }
 0x6db   :  { %2067 = vst [vmem:[%s3520_s4 + $0x88] sm:$0xff] %v1069_v59  ;;  %v1067_v30 = vmul.f32 0.2, %v1061_v60  ;;  %1120 = vrot.lane.b32.xlu1 %v1069_v59, %s2852_s25  ;;  %v1103_v1 = vrot.slane %v1069_v59, 1  ;;  %v1091_v3 = vrot.slane %v1069_v59, 7  ;;  %v2680_v49 = vpack.c.bf16 %v1270_v47, %v1269_v46  ;;  %v1278_v61 = vld [vmem:[#allocation4 + $0x228] sm:$0xff] }
 0x6dc   :  { %2066 = vst [vmem:[%s3520_s4 + $0x80] sm:$0xff] %v1068_v62  ;;  %v1066_v0 = vmul.f32 0.2, %v1056_v63  ;;  %1118 = vrot.lane.b32.xlu0 %v1068_v62, %s2852_s25  ;;  %v1102_v6 = vrot.slane %v1068_v62, 1  ;;  %v1090_v7 = vrot.slane %v1068_v62, 7  ;;  %v2692_v58 = vpack.c.bf16 %v1276_v57, %v1275_v56 }
 0x6dd   :  { %v1071_v8 = vmax.f32 %v1061_v60, %v1067_v30  ;;  %2681 = vmatprep.subr.bf16.mxu1 %v2680_v49  ;;  %v1156_v59 = vsub.s32 5, %v2903_v2  ;;  %v1277_v60 = vld [vmem:[#allocation4 + $0x220] sm:$0xff] }
 0x6de   :  { %v1070_v10 = vmax.f32 %v1056_v63, %v1066_v0  ;;  %v1108_v11 = vsel %vm169_vm0, %v1102_v6, %v1103_v1  ;;  %v1096_v12 = vsel %vm156_vm2, %v1090_v7, %v1091_v3  ;;  %2683 = vmatpush3.bf16.msra.mxu1 %v2680_v49  ;;  %v2696_v62 = vpack.c.bf16 %v1278_v61, %v1277_v60  ;;  %v3278_v63 = vld [vmem:[%s3519_s3] sm:$0xff] }
 0x6df   :  { %2069 = vst [vmem:[%s3520_s4 + $0x98] sm:$0xff] %v1071_v8  ;;  %v1093_v13 = vrot.slane %v1071_v8, 7  ;;  %1124 = vrot.lane.b32.xlu1 %v1071_v8, %s2852_s25  ;;  %v1105_v15 = vrot.slane %v1071_v8, 1  ;;  %2685 = vmatprep.subr.bf16.mxu1 %v2684_v51  ;;  %v1157_v30 = vrot.slane %v3278_v63, %v1156_v59 }
 0x6e0   :  { %2068 = vst [vmem:[%s3520_s4 + $0x90] sm:$0xff] %v1070_v10  ;;  %1134 = vrot.lane.b32.xlu0 %v1108_v11, %s2850_s19  ;;  %v1104_v16 = vrot.slane %v1070_v10, 1  ;;  %v1092_v17 = vrot.slane %v1070_v10, 7 }
 0x6e1   :  { %v1109_v18 = vsel %vm169_vm0, %v1105_v15, %v1102_v6  ;;  %v1097_v19 = vsel %vm156_vm2, %v1093_v13, %v1090_v7 }
 0x6e2   :  { %v1107_v20 = vsel %vm169_vm0, %v1103_v1, %v1104_v16  ;;  %v1106_v22 = vsel %vm169_vm0, %v1104_v16, %v1105_v15  ;;  %v1094_v23 = vsel %vm156_vm2, %v1092_v17, %v1093_v13  ;;  %v1095_v24 = vsel %vm156_vm2, %v1091_v3, %v1092_v17  ;;  %2687 = vmatpush3.bf16.msra.mxu1 %v2684_v51  ;;  %v1279_v1 = vld [vmem:[#allocation4 + $0x230] sm:$0xff]  ;;  %v1280_v3 = vld [vmem:[#allocation4 + $0x238] sm:$0xff] }
 0x6e3   :  { %v1111_v21 = vmul.f32 %v2971_v5, %v1107_v20  ;;  %v1113_v26 = vmul.f32 %v2983_v14, %v1109_v18  ;;  %v1098_v29 = vmul.f32 %v2969_v4, %v1097_v19  ;;  %v1100_v38 = vmul.f32 %v2977_v9, %v1095_v24  ;;  %2689 = vmatprep.subr.bf16.mxu1 %v2688_v55 }
 0x6e4   :  { %1122 = vrot.lane.b32.xlu0 %v1070_v10, %s2852_s25  ;;  %v2700_v6 = vpack.c.bf16 %v1280_v3, %v1279_v1  ;;  %v1461_v1 = vld [vmem:[#allocation4 + $0x248] sm:$0xff]  ;;  %v1462_v3 = vld [vmem:[#allocation4 + $0x250] sm:$0xff] }
 0x6e5   :  { %1136 = vrot.lane.b32.xlu1 %v1111_v21, %s2850_s19 }
 0x6e6   :  { %2691 = vmatpush3.bf16.msra.mxu1 %v2688_v55 }
 0x6e7   :  { %2693 = vmatprep.subr.bf16.mxu1 %v2692_v58 }
 0x6e8   :  { %1138 = vrot.lane.b32.xlu0 %v1106_v22, %s2850_s19 }
 0x6e9   :  { %1140 = vrot.lane.b32.xlu1 %v1113_v26, %s2850_s19 }
 0x6ea   :  { %2695 = vmatpush3.bf16.msra.mxu1 %v2692_v58 }
 0x6eb   :  { %2697 = vmatprep.subr.bf16.mxu1 %v2696_v62 }
 0x6ee   :  { %2699 = vmatpush3.bf16.msra.mxu1 %v2696_v62 }
 0x6ef   :  { %2701 = vmatprep.subr.bf16.mxu1 %v2700_v6 }
 0x6f2   :  { %2703 = vmatpush3.bf16.msra.mxu1 %v2700_v6  ;;  %v1463_v6 = vld [vmem:[#allocation4 + $0x258] sm:$0xff] }
 0x74d   :  { %v1121_v25 = vpop.permute.xlu1 %1120 }
 0x74e   :  { %v1119_v27 = vpop.permute.xlu0 %1118  ;;  %v1147_v36 = vsel %vm380_vm7, %v1096_v12, %v1121_v25 }
 0x74f   :  { %v1146_v31 = vsel %vm380_vm7, %v1098_v29, %v1119_v27 }
 0x751   :  { %v1125_v33 = vpop.permute.xlu1 %1124 }
 0x752   :  { %v1135_v32 = vpop.permute.xlu0 %1134  ;;  %v1149_v42 = vsel %vm380_vm7, %v1094_v23, %v1125_v33 }
 0x753   :  { %v1150_v34 = vsel %vm194_vm1, %v1146_v31, %v1135_v32 }
 0x754   :  { %2398 = vmatprep.mubr.msk.f32.mxu0 %vm393_vm8, %v1150_v34 }
 0x756   :  { %v1123_v35 = vpop.permute.xlu0 %1122 }
 0x757   :  { %v1137_v37 = vpop.permute.xlu1 %1136  ;;  %v1148_v40 = vsel %vm380_vm7, %v1100_v38, %v1123_v35 }
 0x758   :  { %v1151_v39 = vsel %vm194_vm1, %v1147_v36, %v1137_v37 }
 0x759   :  { %2399 = vmatmul.mubr.msk.f32.vlgmr.msra.gmra.mrb[12].mxu0 %vm393_vm8, %v1151_v39 }
 0x75a   :  { %v1139_v41 = vpop.permute.xlu0 %1138 }
 0x75b   :  { %v1152_v43 = vsel %vm194_vm1, %v1148_v40, %v1139_v41  ;;  %v1141_v44 = vpop.permute.xlu1 %1140 }
 0x75c   :  { %v1153_v45 = vsel %vm194_vm1, %v1149_v42, %v1141_v44  ;;  %2401 = vmatprep.mubr.msk.f32.mxu0 %vm393_vm8, %v1152_v43 }
 0x75d   :  { %2402 = vmatmul.mubr.msk.f32.gmra.mrb[14].mxu0 %vm393_vm8, %v1153_v45 }
 0x82c   :  { %v2400_v0 = vpop.f32.mrb[12].mxu0 }
 0x82d   :  { %v1242_v7 = vadd.f32 %v2400_v0, %v1157_v30  ;;  %v1236_v8 = vpop.f32.mrb[13].mxu0 }
 0x82e   :  { %v1237_v10 = vadd.f32 %v1236_v8, %v1157_v30  ;;  %v1464_v8 = vld [vmem:[#allocation4 + $0x260] sm:$0xff] }
 0x82f   :  { %v1256_v11 = vmul.f32 0.2, %v1242_v7 }
 0x830   :  { %v1255_v12 = vmul.f32 0.2, %v1237_v10  ;;  %v2403_v13 = vpop.f32.mrb[14].mxu0 }
 0x831   :  { %v1260_v15 = vmax.f32 %v1242_v7, %v1256_v11  ;;  %v1252_v16 = vadd.f32 %v2403_v13, %v1157_v30  ;;  %v1246_v17 = vpop.f32.mrb[15].mxu0  ;;  %v2708_v7 = vpack.c.bf16 %v1463_v6, %v1462_v3  ;;  %v1467_v13 = vld [vmem:[#allocation4 + $0x278] sm:$0xff] }
 0x832   :  { %v1259_v18 = vmax.f32 %v1237_v10, %v1255_v12  ;;  %v1247_v19 = vadd.f32 %v1246_v17, %v1157_v30  ;;  %v1460_v30 = vld [vmem:[#allocation4 + $0x240] sm:$0xff]  ;;  %v1465_v10 = vld [vmem:[#allocation4 + $0x268] sm:$0xff]  ;;  %v1466_v12 = vld [vmem:[#allocation4 + $0x270] sm:$0xff] }
 0x833   :  { %2075 = vst [vmem:[%s3520_s4 + $0xa8] sm:$0xff] %v1260_v15  ;;  %v1258_v20 = vmul.f32 0.2, %v1252_v16  ;;  %1311 = vrot.lane.b32.xlu1 %v1260_v15, %s2852_s25  ;;  %v1294_v22 = vrot.slane %v1260_v15, 1  ;;  %v1282_v21 = vrot.slane %v1260_v15, 7  ;;  %v2704_v0 = vpack.c.bf16 %v1461_v1, %v1460_v30  ;;  %v1468_v17 = vld [vmem:[#allocation4 + $0x280] sm:$0xff] }
 0x834   :  { %2074 = vst [vmem:[%s3520_s4 + $0xa0] sm:$0xff] %v1259_v18  ;;  %v1257_v23 = vmul.f32 0.2, %v1247_v19  ;;  %1309 = vrot.lane.b32.xlu0 %v1259_v18, %s2852_s25  ;;  %v1293_v24 = vrot.slane %v1259_v18, 1  ;;  %v1281_v26 = vrot.slane %v1259_v18, 7  ;;  %v2712_v11 = vpack.c.bf16 %v1465_v10, %v1464_v8  ;;  %v1469_v18 = vld [vmem:[#allocation4 + $0x288] sm:$0xff] }
 0x835   :  { %v1262_v25 = vmax.f32 %v1252_v16, %v1258_v20  ;;  %2705 = vmatprep.subr.bf16.mxu0 %v2704_v0  ;;  %v2716_v15 = vpack.c.bf16 %v1467_v13, %v1466_v12  ;;  %v1347_v16 = vsub.s32 6, %v2903_v2 }
 0x836   :  { %v1261_v27 = vmax.f32 %v1247_v19, %v1257_v23  ;;  %v1299_v29 = vsel %vm169_vm0, %v1293_v24, %v1294_v22  ;;  %v1287_v31 = vsel %vm156_vm2, %v1281_v26, %v1282_v21  ;;  %2707 = vmatpush3.bf16.msra.mxu0 %v2704_v0  ;;  %v2720_v19 = vpack.c.bf16 %v1469_v18, %v1468_v17 }
 0x837   :  { %2077 = vst [vmem:[%s3520_s4 + $0xb8] sm:$0xff] %v1262_v25  ;;  %v1284_v32 = vrot.slane %v1262_v25, 7  ;;  %1315 = vrot.lane.b32.xlu1 %v1262_v25, %s2852_s25  ;;  %v1296_v33 = vrot.slane %v1262_v25, 1  ;;  %2709 = vmatprep.subr.bf16.mxu0 %v2708_v7  ;;  %v1348_v20 = vrot.slane %v3278_v63, %v1347_v16 }
 0x838   :  { %2076 = vst [vmem:[%s3520_s4 + $0xb0] sm:$0xff] %v1261_v27  ;;  %1325 = vrot.lane.b32.xlu0 %v1299_v29, %s2850_s19  ;;  %v1295_v34 = vrot.slane %v1261_v27, 1  ;;  %v1283_v35 = vrot.slane %v1261_v27, 7 }
 0x839   :  { %v1300_v36 = vsel %vm169_vm0, %v1296_v33, %v1293_v24  ;;  %v1288_v37 = vsel %vm156_vm2, %v1284_v32, %v1281_v26 }
 0x83a   :  { %v1298_v38 = vsel %vm169_vm0, %v1294_v22, %v1295_v34  ;;  %v1297_v39 = vsel %vm169_vm0, %v1295_v34, %v1296_v33  ;;  %v1285_v41 = vsel %vm156_vm2, %v1283_v35, %v1284_v32  ;;  %v1286_v42 = vsel %vm156_vm2, %v1282_v21, %v1283_v35  ;;  %2711 = vmatpush3.bf16.msra.mxu0 %v2708_v7  ;;  %v1470_v22 = vld [vmem:[#allocation4 + $0x290] sm:$0xff]  ;;  %v1471_v21 = vld [vmem:[#allocation4 + $0x298] sm:$0xff] }
 0x83b   :  { %v1302_v40 = vmul.f32 %v2971_v5, %v1298_v38  ;;  %v1304_v43 = vmul.f32 %v2983_v14, %v1300_v36  ;;  %v1289_v46 = vmul.f32 %v2969_v4, %v1288_v37  ;;  %v1291_v55 = vmul.f32 %v2977_v9, %v1286_v42  ;;  %2713 = vmatprep.subr.bf16.mxu0 %v2712_v11 }
 0x83c   :  { %1313 = vrot.lane.b32.xlu0 %v1261_v27, %s2852_s25  ;;  %v2724_v24 = vpack.c.bf16 %v1471_v21, %v1470_v22  ;;  %v1652_v22 = vld [vmem:[#allocation4 + $0x2a8] sm:$0xff]  ;;  %v1653_v21 = vld [vmem:[#allocation4 + $0x2b0] sm:$0xff] }
 0x83d   :  { %1327 = vrot.lane.b32.xlu1 %v1302_v40, %s2850_s19 }
 0x83e   :  { %2715 = vmatpush3.bf16.msra.mxu0 %v2712_v11 }
 0x83f   :  { %2717 = vmatprep.subr.bf16.mxu0 %v2716_v15 }
 0x840   :  { %1329 = vrot.lane.b32.xlu0 %v1297_v39, %s2850_s19 }
 0x841   :  { %1331 = vrot.lane.b32.xlu1 %v1304_v43, %s2850_s19 }
 0x842   :  { %2719 = vmatpush3.bf16.msra.mxu0 %v2716_v15 }
 0x843   :  { %2721 = vmatprep.subr.bf16.mxu0 %v2720_v19 }
 0x846   :  { %2723 = vmatpush3.bf16.msra.mxu0 %v2720_v19 }
 0x847   :  { %2725 = vmatprep.subr.bf16.mxu0 %v2724_v24 }
 0x84a   :  { %2727 = vmatpush3.bf16.msra.mxu0 %v2724_v24  ;;  %v1654_v24 = vld [vmem:[#allocation4 + $0x2b8] sm:$0xff] }
 0x8a5   :  { %v1312_v44 = vpop.permute.xlu1 %1311 }
 0x8a6   :  { %v1310_v45 = vpop.permute.xlu0 %1309  ;;  %v1338_v53 = vsel %vm380_vm7, %v1287_v31, %v1312_v44 }
 0x8a7   :  { %v1337_v47 = vsel %vm380_vm7, %v1289_v46, %v1310_v45 }
 0x8a9   :  { %v1316_v49 = vpop.permute.xlu1 %1315 }
 0x8aa   :  { %v1326_v48 = vpop.permute.xlu0 %1325  ;;  %v1340_v59 = vsel %vm380_vm7, %v1285_v41, %v1316_v49 }
 0x8ab   :  { %v1341_v50 = vsel %vm194_vm1, %v1337_v47, %v1326_v48 }
 0x8ac   :  { %2428 = vmatprep.mubr.msk.f32.mxu1 %vm393_vm8, %v1341_v50 }
 0x8ae   :  { %v1314_v51 = vpop.permute.xlu0 %1313 }
 0x8af   :  { %v1328_v54 = vpop.permute.xlu1 %1327  ;;  %v1339_v57 = vsel %vm380_vm7, %v1291_v55, %v1314_v51 }
 0x8b0   :  { %v1342_v56 = vsel %vm194_vm1, %v1338_v53, %v1328_v54 }
 0x8b1   :  { %2429 = vmatmul.mubr.msk.f32.vlgmr.msra.gmra.mrb[12].mxu1 %vm393_vm8, %v1342_v56 }
 0x8b2   :  { %v1330_v58 = vpop.permute.xlu0 %1329 }
 0x8b3   :  { %v1343_v60 = vsel %vm194_vm1, %v1339_v57, %v1330_v58  ;;  %v1332_v61 = vpop.permute.xlu1 %1331 }
 0x8b4   :  { %v1344_v62 = vsel %vm194_vm1, %v1340_v59, %v1332_v61  ;;  %2431 = vmatprep.mubr.msk.f32.mxu1 %vm393_vm8, %v1343_v60 }
 0x8b5   :  { %2432 = vmatmul.mubr.msk.f32.gmra.mrb[14].mxu1 %vm393_vm8, %v1344_v62 }
 0x984   :  { %v2430_v23 = vpop.f32.mrb[12].mxu1 }
 0x985   :  { %v1433_v26 = vadd.f32 %v2430_v23, %v1348_v20  ;;  %v1427_v25 = vpop.f32.mrb[13].mxu1 }
 0x986   :  { %v1428_v27 = vadd.f32 %v1427_v25, %v1348_v20  ;;  %v1655_v25 = vld [vmem:[#allocation4 + $0x2c0] sm:$0xff] }
 0x987   :  { %v1447_v29 = vmul.f32 0.2, %v1433_v26 }
 0x988   :  { %v1446_v31 = vmul.f32 0.2, %v1428_v27  ;;  %v2433_v32 = vpop.f32.mrb[14].mxu1 }
 0x989   :  { %v1451_v33 = vmax.f32 %v1433_v26, %v1447_v29  ;;  %v1443_v34 = vadd.f32 %v2433_v32, %v1348_v20  ;;  %v1437_v35 = vpop.f32.mrb[15].mxu1  ;;  %v2732_v26 = vpack.c.bf16 %v1654_v24, %v1653_v21  ;;  %v1658_v32 = vld [vmem:[#allocation4 + $0x2d8] sm:$0xff] }
 0x98a   :  { %v1450_v36 = vmax.f32 %v1428_v27, %v1446_v31  ;;  %v1438_v37 = vadd.f32 %v1437_v35, %v1348_v20  ;;  %v1651_v20 = vld [vmem:[#allocation4 + $0x2a0] sm:$0xff]  ;;  %v1656_v27 = vld [vmem:[#allocation4 + $0x2c8] sm:$0xff]  ;;  %v1657_v31 = vld [vmem:[#allocation4 + $0x2d0] sm:$0xff] }
 0x98b   :  { %2083 = vst [vmem:[%s3520_s4 + $0xc8] sm:$0xff] %v1451_v33  ;;  %v1449_v38 = vmul.f32 0.2, %v1443_v34  ;;  %1502 = vrot.lane.b32.xlu1 %v1451_v33, %s2852_s25  ;;  %v1485_v39 = vrot.slane %v1451_v33, 1  ;;  %v1473_v40 = vrot.slane %v1451_v33, 7  ;;  %v2728_v23 = vpack.c.bf16 %v1652_v22, %v1651_v20  ;;  %v1659_v35 = vld [vmem:[#allocation4 + $0x2e0] sm:$0xff] }
 0x98c   :  { %2082 = vst [vmem:[%s3520_s4 + $0xc0] sm:$0xff] %v1450_v36  ;;  %v1448_v41 = vmul.f32 0.2, %v1438_v37  ;;  %1500 = vrot.lane.b32.xlu0 %v1450_v36, %s2852_s25  ;;  %v1484_v42 = vrot.slane %v1450_v36, 1  ;;  %v1472_v43 = vrot.slane %v1450_v36, 7  ;;  %v2736_v29 = vpack.c.bf16 %v1656_v27, %v1655_v25  ;;  %v1660_v36 = vld [vmem:[#allocation4 + $0x2e8] sm:$0xff] }
 0x98d   :  { %v1453_v44 = vmax.f32 %v1443_v34, %v1449_v38  ;;  %2729 = vmatprep.subr.bf16.mxu1 %v2728_v23  ;;  %v2740_v33 = vpack.c.bf16 %v1658_v32, %v1657_v31  ;;  %v1538_v34 = vsub.s32 7, %v2903_v2 }
 0x98e   :  { %v1452_v45 = vmax.f32 %v1438_v37, %v1448_v41  ;;  %v1490_v46 = vsel %vm169_vm0, %v1484_v42, %v1485_v39  ;;  %v1478_v47 = vsel %vm156_vm2, %v1472_v43, %v1473_v40  ;;  %2731 = vmatpush3.bf16.msra.mxu1 %v2728_v23  ;;  %v2744_v37 = vpack.c.bf16 %v1660_v36, %v1659_v35 }
 0x98f   :  { %2085 = vst [vmem:[%s3520_s4 + $0xd8] sm:$0xff] %v1453_v44  ;;  %v1475_v48 = vrot.slane %v1453_v44, 7  ;;  %1506 = vrot.lane.b32.xlu1 %v1453_v44, %s2852_s25  ;;  %v1487_v49 = vrot.slane %v1453_v44, 1  ;;  %2733 = vmatprep.subr.bf16.mxu1 %v2732_v26  ;;  %v1539_v38 = vrot.slane %v3278_v63, %v1538_v34 }
 0x990   :  { %2084 = vst [vmem:[%s3520_s4 + $0xd0] sm:$0xff] %v1452_v45  ;;  %1516 = vrot.lane.b32.xlu0 %v1490_v46, %s2850_s19  ;;  %v1486_v50 = vrot.slane %v1452_v45, 1  ;;  %v1474_v51 = vrot.slane %v1452_v45, 7 }
 0x991   :  { %v1491_v53 = vsel %vm169_vm0, %v1487_v49, %v1484_v42  ;;  %v1479_v54 = vsel %vm156_vm2, %v1475_v48, %v1472_v43 }
 0x992   :  { %v1489_v55 = vsel %vm169_vm0, %v1485_v39, %v1486_v50  ;;  %v1488_v56 = vsel %vm169_vm0, %v1486_v50, %v1487_v49  ;;  %v1476_v58 = vsel %vm156_vm2, %v1474_v51, %v1475_v48  ;;  %v1477_v59 = vsel %vm156_vm2, %v1473_v40, %v1474_v51  ;;  %2735 = vmatpush3.bf16.msra.mxu1 %v2732_v26  ;;  %v1661_v39 = vld [vmem:[#allocation4 + $0x2f0] sm:$0xff]  ;;  %v1662_v40 = vld [vmem:[#allocation4 + $0x2f8] sm:$0xff] }
 0x993   :  { %v1493_v57 = vmul.f32 %v2971_v5, %v1489_v55  ;;  %v1495_v60 = vmul.f32 %v2983_v14, %v1491_v53  ;;  %v1480_v30 = vmul.f32 %v2969_v4, %v1479_v54  ;;  %v1482_v11 = vmul.f32 %v2977_v9, %v1477_v59  ;;  %2737 = vmatprep.subr.bf16.mxu1 %v2736_v29 }
 0x994   :  { %1504 = vrot.lane.b32.xlu0 %v1452_v45, %s2852_s25  ;;  %v2748_v42 = vpack.c.bf16 %v1662_v40, %v1661_v39  ;;  %v1844_v39 = vld [vmem:[#allocation4 + $0x310] sm:$0xff] }
 0x995   :  { %1518 = vrot.lane.b32.xlu1 %v1493_v57, %s2850_s19 }
 0x996   :  { %2739 = vmatpush3.bf16.msra.mxu1 %v2736_v29 }
 0x997   :  { %2741 = vmatprep.subr.bf16.mxu1 %v2740_v33 }
 0x998   :  { %1520 = vrot.lane.b32.xlu0 %v1488_v56, %s2850_s19 }
 0x999   :  { %1522 = vrot.lane.b32.xlu1 %v1495_v60, %s2850_s19 }
 0x99a   :  { %2743 = vmatpush3.bf16.msra.mxu1 %v2740_v33 }
 0x99b   :  { %2745 = vmatprep.subr.bf16.mxu1 %v2744_v37 }
 0x99e   :  { %2747 = vmatpush3.bf16.msra.mxu1 %v2744_v37  ;;  %v1842_v37 = vld [vmem:[#allocation4 + $0x300] sm:$0xff] }
 0x99f   :  { %2749 = vmatprep.subr.bf16.mxu1 %v2748_v42 }
 0x9a2   :  { %2751 = vmatpush3.bf16.msra.mxu1 %v2748_v42 }
 0x9fd   :  { %v1503_v61 = vpop.permute.xlu1 %1502 }
 0x9fe   :  { %v1501_v62 = vpop.permute.xlu0 %1500  ;;  %v1529_v8 = vsel %vm380_vm7, %v1478_v47, %v1503_v61 }
 0x9ff   :  { %v1528_v1 = vsel %vm380_vm7, %v1480_v30, %v1501_v62 }
 0xa01   :  { %v1507_v0 = vpop.permute.xlu1 %1506 }
 0xa02   :  { %v1517_v3 = vpop.permute.xlu0 %1516  ;;  %v1531_v16 = vsel %vm380_vm7, %v1476_v58, %v1507_v0 }
 0xa03   :  { %v1532_v6 = vsel %vm194_vm1, %v1528_v1, %v1517_v3 }
 0xa04   :  { %2458 = vmatprep.mubr.msk.f32.mxu0 %vm393_vm8, %v1532_v6 }
 0xa06   :  { %v1505_v7 = vpop.permute.xlu0 %1504 }
 0xa07   :  { %v1519_v10 = vpop.permute.xlu1 %1518  ;;  %v1530_v13 = vsel %vm380_vm7, %v1482_v11, %v1505_v7 }
 0xa08   :  { %v1533_v12 = vsel %vm194_vm1, %v1529_v8, %v1519_v10 }
 0xa09   :  { %2459 = vmatmul.mubr.msk.f32.vlgmr.msra.gmra.mrb[16].mxu0 %vm393_vm8, %v1533_v12 }
 0xa0a   :  { %v1521_v15 = vpop.permute.xlu0 %1520 }
 0xa0b   :  { %v1534_v17 = vsel %vm194_vm1, %v1530_v13, %v1521_v15  ;;  %v1523_v18 = vpop.permute.xlu1 %1522 }
 0xa0c   :  { %v1535_v19 = vsel %vm194_vm1, %v1531_v16, %v1523_v18  ;;  %2461 = vmatprep.mubr.msk.f32.mxu0 %vm393_vm8, %v1534_v17 }
 0xa0d   :  { %2462 = vmatmul.mubr.msk.f32.gmra.mrb[18].mxu0 %vm393_vm8, %v1535_v19 }
 0xadc   :  { %v2460_v41 = vpop.f32.mrb[16].mxu0 }
 0xadd   :  { %v1624_v43 = vadd.f32 %v2460_v41, %v1539_v38  ;;  %v1618_v44 = vpop.f32.mrb[17].mxu0  ;;  %v1845_v41 = vld [vmem:[#allocation4 + $0x318] sm:$0xff] }
 0xade   :  { %v1619_v45 = vadd.f32 %v1618_v44, %v1539_v38  ;;  %v2756_v42 = vpack.c.bf16 %v1845_v41, %v1844_v39  ;;  %v1847_v44 = vld [vmem:[#allocation4 + $0x328] sm:$0xff] }
 0xadf   :  { %v1638_v46 = vmul.f32 0.2, %v1624_v43 }
 0xae0   :  { %v1637_v47 = vmul.f32 0.2, %v1619_v45  ;;  %v2463_v48 = vpop.f32.mrb[18].mxu0 }
 0xae1   :  { %v1642_v49 = vmax.f32 %v1624_v43, %v1638_v46  ;;  %v1634_v50 = vadd.f32 %v2463_v48, %v1539_v38  ;;  %v1628_v51 = vpop.f32.mrb[19].mxu0  ;;  %v1846_v43 = vld [vmem:[#allocation4 + $0x320] sm:$0xff]  ;;  %v1848_v46 = vld [vmem:[#allocation4 + $0x330] sm:$0xff]  ;;  %v3444_v48 = vld [vmem:[%s3519_s3 + $0x8] sm:$0x3] }
 0xae2   :  { %v1641_v53 = vmax.f32 %v1619_v45, %v1637_v47  ;;  %v1629_v54 = vadd.f32 %v1628_v51, %v1539_v38  ;;  %v1843_v38 = vld [vmem:[#allocation4 + $0x308] sm:$0xff]  ;;  %v2760_v45 = vpack.c.bf16 %v1847_v44, %v1846_v43  ;;  %v1849_v47 = vld [vmem:[#allocation4 + $0x338] sm:$0xff]  ;;  %v1850_v51 = vld [vmem:[#allocation4 + $0x340] sm:$0xff] }
 0xae3   :  { %2091 = vst [vmem:[%s3520_s4 + $0xe8] sm:$0xff] %v1642_v49  ;;  %v1640_v63 = vmul.f32 0.2, %v1634_v50  ;;  %1693 = vrot.lane.b32.xlu1 %v1642_v49, %s2852_s25  ;;  %v1676_v55 = vrot.slane %v1642_v49, 1  ;;  %v1664_v56 = vrot.slane %v1642_v49, 7  ;;  %v2752_v40 = vpack.c.bf16 %v1843_v38, %v1842_v37 }
 0xae4   :  { %2090 = vst [vmem:[%s3520_s4 + $0xe0] sm:$0xff] %v1641_v53  ;;  %v1639_v57 = vmul.f32 0.2, %v1629_v54  ;;  %1691 = vrot.lane.b32.xlu0 %v1641_v53, %s2852_s25  ;;  %v1675_v58 = vrot.slane %v1641_v53, 1  ;;  %v1663_v59 = vrot.slane %v1641_v53, 7  ;;  %v2764_v49 = vpack.c.bf16 %v1849_v47, %v1848_v46  ;;  %v1851_v53 = vld [vmem:[#allocation4 + $0x348] sm:$0xff] }
 0xae5   :  { %v1644_v60 = vmax.f32 %v1634_v50, %v1640_v63  ;;  %2753 = vmatprep.subr.bf16.mxu0 %v2752_v40  ;;  %2776 = vmatprep.subr.bf16.mxu1 %v2752_v40  ;;  %v1730_v50 = vrot.slane %v3444_v48, %v201_v28  ;;  %v1921_v47 = vrot.slane %v3444_v48, %v391_v52 }
 0xae6   :  { %v1643_v61 = vmax.f32 %v1629_v54, %v1639_v57  ;;  %v1681_v62 = vsel %vm169_vm0, %v1675_v58, %v1676_v55  ;;  %v1669_v30 = vsel %vm156_vm2, %v1663_v59, %v1664_v56  ;;  %2755 = vmatpush3.bf16.msra.mxu0 %v2752_v40  ;;  %v2768_v54 = vpack.c.bf16 %v1851_v53, %v1850_v51  ;;  %v1852_v57 = vld [vmem:[#allocation4 + $0x350] sm:$0xff] }
 0xae7   :  { %2093 = vst [vmem:[%s3520_s4 + $0xf8] sm:$0xff] %v1644_v60  ;;  %v1666_v1 = vrot.slane %v1644_v60, 7  ;;  %1697 = vrot.lane.b32.xlu1 %v1644_v60, %s2852_s25  ;;  %v1678_v3 = vrot.slane %v1644_v60, 1  ;;  %2757 = vmatprep.subr.bf16.mxu0 %v2756_v42 }
 0xae8   :  { %2092 = vst [vmem:[%s3520_s4 + $0xf0] sm:$0xff] %v1643_v61  ;;  %1707 = vrot.lane.b32.xlu0 %v1681_v62, %s2850_s19  ;;  %v1677_v0 = vrot.slane %v1643_v61, 1  ;;  %v1665_v6 = vrot.slane %v1643_v61, 7 }
 0xae9   :  { %v1682_v7 = vsel %vm169_vm0, %v1678_v3, %v1675_v58  ;;  %v1670_v8 = vsel %vm156_vm2, %v1666_v1, %v1663_v59  ;;  %v1853_v58 = vld [vmem:[#allocation4 + $0x358] sm:$0xff] }
 0xaea   :  { %v1680_v10 = vsel %vm169_vm0, %v1676_v55, %v1677_v0  ;;  %v1679_v11 = vsel %vm169_vm0, %v1677_v0, %v1678_v3  ;;  %v1667_v13 = vsel %vm156_vm2, %v1665_v6, %v1666_v1  ;;  %v1668_v15 = vsel %vm156_vm2, %v1664_v56, %v1665_v6  ;;  %2759 = vmatpush3.bf16.msra.mxu0 %v2756_v42 }
 0xaeb   :  { %v1684_v12 = vmul.f32 %v2971_v5, %v1680_v10  ;;  %v1686_v16 = vmul.f32 %v2983_v14, %v1682_v7  ;;  %v1671_v19 = vmul.f32 %v2969_v4, %v1670_v8  ;;  %v1673_v27 = vmul.f32 %v2977_v9, %v1668_v15  ;;  %2761 = vmatprep.subr.bf16.mxu0 %v2760_v45 }
 0xaec   :  { %1695 = vrot.lane.b32.xlu0 %v1643_v61, %s2852_s25  ;;  %v2772_v60 = vpack.c.bf16 %v1853_v58, %v1852_v57 }
 0xaed   :  { %1709 = vrot.lane.b32.xlu1 %v1684_v12, %s2850_s19 }
 0xaee   :  { %2763 = vmatpush3.bf16.msra.mxu0 %v2760_v45 }
 0xaef   :  { %2765 = vmatprep.subr.bf16.mxu0 %v2764_v49 }
 0xaf0   :  { %1711 = vrot.lane.b32.xlu0 %v1679_v11, %s2850_s19 }
 0xaf1   :  { %1713 = vrot.lane.b32.xlu1 %v1686_v16, %s2850_s19 }
 0xaf2   :  { %2767 = vmatpush3.bf16.msra.mxu0 %v2764_v49 }
 0xaf3   :  { %2769 = vmatprep.subr.bf16.mxu0 %v2768_v54 }
 0xaf6   :  { %2771 = vmatpush3.bf16.msra.mxu0 %v2768_v54 }
 0xaf7   :  { %2773 = vmatprep.subr.bf16.mxu0 %v2772_v60 }
 0xafa   :  { %2775 = vmatpush3.bf16.msra.mxu0 %v2772_v60 }
 0xb55   :  { %v1694_v17 = vpop.permute.xlu1 %1693 }
 0xb56   :  { %v1692_v18 = vpop.permute.xlu0 %1691  ;;  %v1720_v26 = vsel %vm380_vm7, %v1669_v30, %v1694_v17 }
 0xb57   :  { %v1719_v20 = vsel %vm380_vm7, %v1671_v19, %v1692_v18 }
 0xb59   :  { %v1698_v21 = vpop.permute.xlu1 %1697 }
 0xb5a   :  { %v1708_v22 = vpop.permute.xlu0 %1707  ;;  %v1722_v33 = vsel %vm380_vm7, %v1667_v13, %v1698_v21 }
 0xb5b   :  { %v1723_v23 = vsel %vm194_vm1, %v1719_v20, %v1708_v22 }
 0xb5c   :  { %2488 = vmatprep.mubr.msk.f32.mxu1 %vm393_vm8, %v1723_v23 }
 0xb5e   :  { %v1696_v24 = vpop.permute.xlu0 %1695 }
 0xb5f   :  { %v1710_v25 = vpop.permute.xlu1 %1709  ;;  %v1721_v31 = vsel %vm380_vm7, %v1673_v27, %v1696_v24 }
 0xb60   :  { %v1724_v29 = vsel %vm194_vm1, %v1720_v26, %v1710_v25 }
 0xb61   :  { %2489 = vmatmul.mubr.msk.f32.vlgmr.msra.gmra.mrb[16].mxu1 %vm393_vm8, %v1724_v29 }
 0xb62   :  { %v1712_v32 = vpop.permute.xlu0 %1711  ;;  %2782 = vmatpush3.bf16.msra.mxu1 %v2752_v40 }
 0xb63   :  { %v1725_v34 = vsel %vm194_vm1, %v1721_v31, %v1712_v32  ;;  %v1714_v35 = vpop.permute.xlu1 %1713  ;;  %2777 = vmatprep.subr.bf16.mxu1 %v2756_v42 }
 0xb64   :  { %v1726_v36 = vsel %vm194_vm1, %v1722_v33, %v1714_v35  ;;  %2491 = vmatprep.mubr.msk.f32.mxu1 %vm393_vm8, %v1725_v34 }
 0xb65   :  { %2492 = vmatmul.mubr.msk.f32.gmra.mrb[18].mxu1 %vm393_vm8, %v1726_v36 }
 0xb66   :  { %2783 = vmatpush3.bf16.msra.mxu1 %v2756_v42 }
 0xb67   :  { %2778 = vmatprep.subr.bf16.mxu1 %v2760_v45 }
 0xb6a   :  { %2784 = vmatpush3.bf16.msra.mxu1 %v2760_v45 }
 0xb6b   :  { %2779 = vmatprep.subr.bf16.mxu1 %v2764_v49 }
 0xb6e   :  { %2785 = vmatpush3.bf16.msra.mxu1 %v2764_v49 }
 0xb6f   :  { %2780 = vmatprep.subr.bf16.mxu1 %v2768_v54 }
 0xb72   :  { %2786 = vmatpush3.bf16.msra.mxu1 %v2768_v54 }
 0xb73   :  { %2781 = vmatprep.subr.bf16.mxu1 %v2772_v60 }
 0xb76   :  { %2787 = vmatpush3.bf16.msra.mxu1 %v2772_v60 }
 0xc34   :  { %v2490_v63 = vpop.f32.mrb[16].mxu1 }
 0xc35   :  { %v1815_v55 = vadd.f32 %v2490_v63, %v1730_v50  ;;  %v1809_v56 = vpop.f32.mrb[17].mxu1 }
 0xc36   :  { %v1810_v59 = vadd.f32 %v1809_v56, %v1730_v50 }
 0xc37   :  { %v1829_v61 = vmul.f32 0.2, %v1815_v55 }
 0xc38   :  { %v1828_v62 = vmul.f32 0.2, %v1810_v59  ;;  %v2493_v30 = vpop.f32.mrb[18].mxu1 }
 0xc39   :  { %v1833_v28 = vmax.f32 %v1815_v55, %v1829_v61  ;;  %v1825_v1 = vadd.f32 %v2493_v30, %v1730_v50  ;;  %v1819_v3 = vpop.f32.mrb[19].mxu1 }
 0xc3a   :  { %v1832_v0 = vmax.f32 %v1810_v59, %v1828_v62  ;;  %v1820_v6 = vadd.f32 %v1819_v3, %v1730_v50 }
 0xc3b   :  { %2099 = vst [vmem:[%s3520_s4 + $0x108] sm:$0xff] %v1833_v28  ;;  %v1831_v7 = vmul.f32 0.2, %v1825_v1  ;;  %1884 = vrot.lane.b32.xlu0 %v1833_v28, %s2852_s25  ;;  %v1867_v8 = vrot.slane %v1833_v28, 1  ;;  %v1855_v10 = vrot.slane %v1833_v28, 7 }
 0xc3c   :  { %2098 = vst [vmem:[%s3520_s4 + $0x100] sm:$0xff] %v1832_v0  ;;  %v1830_v11 = vmul.f32 0.2, %v1820_v6  ;;  %v1866_v12 = vrot.slane %v1832_v0, 1  ;;  %v1854_v13 = vrot.slane %v1832_v0, 7 }
 0xc3d   :  { %v1835_v15 = vmax.f32 %v1825_v1, %v1831_v7 }
 0xc3e   :  { %v1834_v16 = vmax.f32 %v1820_v6, %v1830_v11  ;;  %v1872_v17 = vsel %vm169_vm0, %v1866_v12, %v1867_v8  ;;  %v1860_v18 = vsel %vm156_vm2, %v1854_v13, %v1855_v10 }
 0xc3f   :  { %2101 = vst [vmem:[%s3520_s4 + $0x118] sm:$0xff] %v1835_v15  ;;  %1888 = vrot.lane.b32.xlu1 %v1835_v15, %s2852_s25  ;;  %1882 = vrot.lane.b32.xlu0 %v1832_v0, %s2852_s25  ;;  %v1869_v19 = vrot.slane %v1835_v15, 1  ;;  %v1857_v20 = vrot.slane %v1835_v15, 7 }
 0xc40   :  { %2100 = vst [vmem:[%s3520_s4 + $0x110] sm:$0xff] %v1834_v16  ;;  %v1868_v22 = vrot.slane %v1834_v16, 1  ;;  %v1856_v21 = vrot.slane %v1834_v16, 7 }
 0xc41   :  { %v1873_v23 = vsel %vm169_vm0, %v1869_v19, %v1866_v12  ;;  %v1861_v24 = vsel %vm156_vm2, %v1857_v20, %v1854_v13 }
 0xc42   :  { %v1870_v26 = vsel %vm169_vm0, %v1868_v22, %v1869_v19  ;;  %v1871_v25 = vsel %vm169_vm0, %v1867_v8, %v1868_v22  ;;  %v1858_v27 = vsel %vm156_vm2, %v1856_v21, %v1857_v20  ;;  %v1859_v29 = vsel %vm156_vm2, %v1855_v10, %v1856_v21 }
 0xc43   :  { %1886 = vrot.lane.b32.xlu1 %v1834_v16, %s2852_s25  ;;  %1898 = vrot.lane.b32.xlu0 %v1872_v17, %s2850_s19  ;;  %v1875_v31 = vmul.f32 %v2971_v5, %v1871_v25  ;;  %v1877_v32 = vmul.f32 %v2983_v14, %v1873_v23  ;;  %v1862_v36 = vmul.f32 %v2969_v4, %v1861_v24 }
 0xc44   :  { %v1864_v5 = vmul.f32 %v2977_v9, %v1859_v29 }
 0xc47   :  { %1902 = vrot.lane.b32.xlu1 %v1870_v26, %s2850_s19  ;;  %1900 = vrot.lane.b32.xlu0 %v1875_v31, %s2850_s19 }
 0xc4b   :  { %1904 = vrot.lane.b32.xlu1 %v1877_v32, %s2850_s19 }
 0xcad   :  { %v1885_v33 = vpop.permute.xlu0 %1884 }
 0xcae   :  { %v1911_v41 = vsel %vm380_vm7, %v1860_v18, %v1885_v33 }
 0xcb1   :  { %v1889_v34 = vpop.permute.xlu1 %1888  ;;  %v1883_v35 = vpop.permute.xlu0 %1882 }
 0xcb2   :  { %v1910_v37 = vsel %vm380_vm7, %v1862_v36, %v1883_v35  ;;  %v1913_v45 = vsel %vm380_vm7, %v1858_v27, %v1889_v34 }
 0xcb5   :  { %v1887_v38 = vpop.permute.xlu1 %1886  ;;  %v1899_v39 = vpop.permute.xlu0 %1898 }
 0xcb6   :  { %v1914_v40 = vsel %vm194_vm1, %v1910_v37, %v1899_v39  ;;  %v1912_v14 = vsel %vm380_vm7, %v1864_v5, %v1887_v38 }
 0xcb7   :  { %2518 = vmatprep.mubr.msk.f32.mxu0 %vm393_vm8, %v1914_v40 }
 0xcb9   :  { %v1903_v42 = vpop.permute.xlu1 %1902  ;;  %v1901_v43 = vpop.permute.xlu0 %1900 }
 0xcba   :  { %v1916_v44 = vsel %vm194_vm1, %v1912_v14, %v1903_v42  ;;  %v1915_v4 = vsel %vm194_vm1, %v1911_v41, %v1901_v43 }
 0xcbb   :  { %2519 = vmatmul.mubr.msk.f32.vlgmr.msra.gmra.mrb[20].mxu0 %vm393_vm8, %v1915_v4  ;;  %2521 = vmatprep.mubr.msk.f32.mxu1 %vm393_vm8, %v1916_v44 }
 0xcbd   :  { %v1905_v46 = vpop.permute.xlu1 %1904 }
 0xcbe   :  { %v1917_v9 = vsel %vm194_vm1, %v1913_v45, %v1905_v46 }
 0xcbf   :  { %2522 = vmatmul.mubr.msk.f32.vlgmr.msra.gmra.mrb[20].mxu1 %vm393_vm8, %v1917_v9 }
 0xd8e   :  { %v2520_v49 = vpop.f32.mrb[20].mxu0 }
 0xd8f   :  { %v2006_v50 = vadd.f32 %v2520_v49, %v1921_v47  ;;  %v2000_v51 = vpop.f32.mrb[21].mxu0 }
 0xd90   :  { %v2001_v53 = vadd.f32 %v2000_v51, %v1921_v47 }
 0xd91   :  { %2107 = vst [vmem:[%s3520_s4 + $0x128] sm:$0xff] %v2006_v50 }
 0xd92   :  { %2106 = vst [vmem:[%s3520_s4 + $0x120] sm:$0xff] %v2001_v53  ;;  %v2523_v54 = vpop.f32.mrb[20].mxu1 }
 0xd93   :  { %v2016_v63 = vadd.f32 %v2523_v54, %v1921_v47  ;;  %v2010_v55 = vpop.f32.mrb[21].mxu1 }
 0xd94   :  { %v2011_v56 = vadd.f32 %v2010_v55, %v1921_v47 }
 0xd95   :  { %2109 = vst [vmem:[%s3520_s4 + $0x138] sm:$0xff] %v2016_v63 }
 0xd96   :  { %2108 = vst [vmem:[%s3520_s4 + $0x130] sm:$0xff] %v2011_v56 }
 0xd97   :  { %2028 = vsyncpa [#allocation3], 1 }
 0xd98   :  { %2029 = vsyncpa [#allocation5], 1 }

</bundles_post_ra>
